<compile_context>
chip_gen: v7x
topology: tpu7x:2x2x1
jax: 0.10.0
libtpu: 0.0.40
codegen_flags: <defaults>
</compile_context>

<pallas_src>
import functools

import jax
import jax.numpy as jnp
from jax.experimental import pallas as pl
from jax.experimental.pallas import tpu as pltpu


# ----------------------------- helpers ------------------------------------- #

def _pick_tile(c, target):
    """Largest 128-multiple divisor of c that is <= target (or c itself if small)."""
    if c <= target:
        return c
    t = (target // 128) * 128
    while t >= 128:
        if c % t == 0:
            return t
        t -= 128
    return c


def _mosaic_params(semantics, *buf_bytes, scratch_bytes=0):
    # double-buffered pipeline buffers + resident scratch + headroom
    need = 2 * sum(buf_bytes) + scratch_bytes + (4 << 20)
    limit = int(min(max(need, 32 << 20), 48 << 20))
    return pltpu.CompilerParams(dimension_semantics=semantics,
                                vmem_limit_bytes=limit)


# ----------------------------- Pallas kernel -------------------------------- #

def _gemm_scale_bias_act_kernel(x_ref, w_ref, scale_ref, bias_ref, o_ref,
                                acc_ref, *, relu):
    # x_ref    : (M, k_t)        bf16 activations (one K tile)
    # w_ref    : (k_t, cout_t)   bf16 weights
    # scale_ref: (1, cout_t)     f32 per-channel scale (folded BN or ones)
    # bias_ref : (1, cout_t)     f32 per-channel bias  (folded BN or conv bias)
    # o_ref    : (M, cout_t)     bf16 output (lane-dense 2D slab)
    # acc_ref  : (M, cout_t)     f32 VMEM accumulator, resident across K steps
    k = pl.program_id(1)

    @pl.when(k == 0)
    def _init():
        acc_ref[...] = jnp.zeros_like(acc_ref)

    acc_ref[...] += jnp.dot(x_ref[...], w_ref[...],
                            preferred_element_type=jnp.float32)

    @pl.when(k == pl.num_programs(1) - 1)
    def _finalize():
        y = acc_ref[...] * scale_ref[...] + bias_ref[...]
        if relu:
            y = jnp.maximum(y, 0.0)
        o_ref[...] = y.astype(o_ref.dtype)


def gemm_scale_bias_act(x2d, w2d, scale, bias, *, relu,
                        k_tile=512, cout_tile=1024, out_dtype=jnp.bfloat16):
    """out = act((x2d @ w2d) * scale + bias); x2d:(M,K), w2d:(K,Cout)."""
    M, K = x2d.shape
    Kw, Cout = w2d.shape
    assert K == Kw
    k_t = _pick_tile(K, k_tile)
    cout_t = _pick_tile(Cout, cout_tile)
    n_k = K // k_t
    n_co = Cout // cout_t

    x2d = x2d.astype(jnp.bfloat16)
    w2d = w2d.astype(jnp.bfloat16)
    scale = scale.reshape(1, Cout).astype(jnp.float32)
    bias = bias.reshape(1, Cout).astype(jnp.float32)

    x_bytes = M * k_t * 2
    w_bytes = k_t * cout_t * 2
    o_bytes = M * cout_t * jnp.dtype(out_dtype).itemsize
    acc_bytes = M * cout_t * 4

    kernel = functools.partial(_gemm_scale_bias_act_kernel, relu=relu)
    out = pl.pallas_call(
        kernel,
        out_shape=jax.ShapeDtypeStruct((M, Cout), out_dtype),
        grid_spec=pltpu.PrefetchScalarGridSpec(
            num_scalar_prefetch=0,
            grid=(n_co, n_k),                      # reduction (K) axis last
            in_specs=[
                pl.BlockSpec((M, k_t), lambda co, k: (0, k)),
                pl.BlockSpec((k_t, cout_t), lambda co, k: (k, co)),
                pl.BlockSpec((1, cout_t), lambda co, k: (0, co)),
                pl.BlockSpec((1, cout_t), lambda co, k: (0, co)),
            ],
            out_specs=pl.BlockSpec((M, cout_t), lambda co, k: (0, co)),
            scratch_shapes=[pltpu.VMEM((M, cout_t), jnp.float32)],
        ),
        compiler_params=_mosaic_params(("parallel", "arbitrary"),
                                       x_bytes, w_bytes, o_bytes,
                                       scratch_bytes=acc_bytes),
    )(x2d, w2d, scale, bias)
    return out


# ------------------------------ conv wrappers ------------------------------ #

def _im2col_3x3_same(x):
    """x: (N,H,W,C) -> (N*H*W, 9*C). Taps ordered (dy,dx)-major to match
    weights laid out as (kh,kw,Cin,Cout).reshape(9*Cin, Cout)."""
    N, H, W, C = x.shape
    xp = jnp.pad(x, ((0, 0), (1, 1), (1, 1), (0, 0)))
    cols = [xp[:, dy:dy + H, dx:dx + W, :].reshape(N * H * W, C)
            for dy in range(3) for dx in range(3)]
    return jnp.concatenate(cols, axis=-1)


def conv3x3_bn_relu(x, w_oihw, bn_scale, bn_bias, *,
                    k_tile=512, cout_tile=1024, out_dtype=jnp.bfloat16):
    """x: (N,H,W,Cin); w_oihw: (Cout,Cin,3,3) -> (N,H,W,Cout) in `out_dtype`."""
    N, H, W, Cin = x.shape
    Cout = w_oihw.shape[0]
    x_col = _im2col_3x3_same(x.astype(jnp.bfloat16))                     # (M, 9*Cin)
    w = jnp.transpose(w_oihw, (2, 3, 1, 0)).reshape(9 * Cin, Cout)       # (9*Cin, Cout)
    out = gemm_scale_bias_act(x_col, w, bn_scale, bn_bias, relu=True,
                              k_tile=k_tile, cout_tile=cout_tile,
                              out_dtype=out_dtype)
    return out.reshape(N, H, W, Cout)


def conv1x1_bias(x, w_oihw, b, *, k_tile=512, cout_tile=1024,
                 out_dtype=jnp.bfloat16):
    """x: (N,H,W,Cin); w_oihw: (Cout,Cin,1,1), b: (Cout,) -> (N,H,W,Cout)."""
    N, H, W, Cin = x.shape
    Cout = w_oihw.shape[0]
    x2d = x.reshape(N * H * W, Cin)
    w = jnp.transpose(w_oihw[:, :, 0, 0], (1, 0))                        # (Cin, Cout)
    scale = jnp.ones((Cout,), jnp.float32)
    out = gemm_scale_bias_act(x2d, w, scale, b, relu=False,
                              k_tile=k_tile, cout_tile=cout_tile,
                              out_dtype=out_dtype)
    return out.reshape(N, H, W, Cout)


# ------------------------------- module logic ------------------------------ #

def fold_bn(gamma, beta, mean, var, eps=1e-5):
    scale = gamma / jnp.sqrt(var + eps)
    return scale, beta - mean * scale


def feature_fusion(params, temporal_feat, spatial_feat, *,
                   k_tile=512, cout_tile=1024):
    """vfuseACT_multihead.feature_fusion, NHWC features (bf16 output)."""
    x_concat = jnp.concatenate([temporal_feat, spatial_feat], axis=-1)  # cat dim=1 (channels)
    s0, b0 = fold_bn(*params["combine_bn"])
    x = conv3x3_bn_relu(x_concat, params["combine_conv_w"], s0, b0,
                        k_tile=k_tile, cout_tile=cout_tile)              # conv_bn_relu 3x3
    x_3 = conv1x1_bias(x, params["combine_1x1_w"], params["combine_1x1_b"],
                       k_tile=k_tile, cout_tile=cout_tile)               # Conv2d k=1
    s1, b1 = fold_bn(*params["refine_bn"])
    feature = conv3x3_bn_relu(x_3, params["refine_conv_w"], s1, b1,
                              k_tile=k_tile, cout_tile=cout_tile)        # feat_refine
    return feature


def _standin_backbone(proj, imgs_nchw, feat_hw):
    # TODO(synk): stand-in for ResNetTSM / ResNet backbone (definitions unavailable):
    # spatial average-pool to the backbone output resolution + channel projection.
    N, C, Himg, Wimg = imgs_nchw.shape
    H, W = feat_hw
    x = jnp.transpose(imgs_nchw, (0, 2, 3, 1))                      # NCHW -> NHWC
    x = x.reshape(N, H, Himg // H, W, Wimg // W, C).mean(axis=(2, 4))
    return jnp.einsum("nhwc,cd->nhwd", x, proj)


def vfuse_forward(params, input_data, sample_rate=4, feat_hw=(8, 8),
                  k_tile=512, cout_tile=1024):
    masks = input_data["masks"]                       # (B, T)
    imgs = input_data["imgs"]                         # (B, clip_seg, C, Himg, Wimg)
    masks = masks[:, None, :]                         # masks.unsqueeze(1)
    imgs = imgs.reshape((-1,) + imgs.shape[2:])       # reshape([-1] + imgs.shape[2:])
    backbone_masks = masks[:, :, ::sample_rate].reshape(-1)[:, None, None, None]

    # TODO(synk): AvgPoolNeck + MemoryTCNHead (action/branch scores) are external
    # undefined modules; forward stops at the fused feature implemented here.
    x_1 = _standin_backbone(params["tsm_proj"], imgs, feat_hw) * backbone_masks
    x_2 = _standin_backbone(params["det_proj"], imgs, feat_hw) * backbone_masks
    feature = feature_fusion(params, x_1, x_2, k_tile=k_tile, cout_tile=cout_tile)
    return feature


# -------------------------------- reference -------------------------------- #
# bf16-matched reference (bf16 operands, f32 accumulation, bf16 layer outputs)

def _ref_conv3x3_bn_relu(x, w_oihw, scale, bias):
    w = jnp.transpose(w_oihw, (2, 3, 1, 0)).astype(jnp.bfloat16)  # HWIO
    y = jax.lax.conv_general_dilated(
        x.astype(jnp.bfloat16), w, (1, 1), ((1, 1), (1, 1)),
        dimension_numbers=("NHWC", "HWIO", "NHWC"),
        preferred_element_type=jnp.float32)
    y = jnp.maximum(y * scale + bias, 0.0)
    return y.astype(jnp.bfloat16)


def _ref_feature_fusion(params, t, s):
    x = jnp.concatenate([t, s], axis=-1)
    s0, b0 = fold_bn(*params["combine_bn"])
    x = _ref_conv3x3_bn_relu(x, params["combine_conv_w"], s0, b0)
    w1 = jnp.transpose(params["combine_1x1_w"][:, :, 0, 0], (1, 0)).astype(jnp.bfloat16)
    N, H, W, _ = x.shape
    y = jnp.dot(x.reshape(N * H * W, -1).astype(jnp.bfloat16), w1,
                preferred_element_type=jnp.float32) + params["combine_1x1_b"]
    x = y.reshape(N, H, W, -1).astype(jnp.bfloat16)
    s1, b1 = fold_bn(*params["refine_bn"])
    return _ref_conv3x3_bn_relu(x, params["refine_conv_w"], s1, b1)


# ----------------------------------- main ----------------------------------- #

if __name__ == "__main__":
    key = jax.random.PRNGKey(0)
    B, clip_seg_num, sample_rate = 2, 4, 4
    C_img, Himg, Wimg = 3, 32, 32
    C_branch, H, W = 128, 8, 8         # per-branch backbone channels (real: 2048, 7x7)
    Cc, Cm = 2 * C_branch, C_branch    # concat / combined channels (real: 4096 / 2048)
    T = clip_seg_num * sample_rate

    ks = jax.random.split(key, 8)
    imgs = jax.random.normal(ks[0], (B, clip_seg_num, C_img, Himg, Wimg), jnp.float32)
    masks = jnp.ones((B, T), jnp.float32)

    params = {
        # feat_combine[0]: conv_bn_relu(4096 -> 2048, k=3, pad=1, bias=False)
        "combine_conv_w": 0.05 * jax.random.normal(ks[1], (Cm, Cc, 3, 3), jnp.float32),
        "combine_bn": (1.0 + 0.1 * jax.random.normal(ks[2], (Cm,), jnp.float32),
                       0.05 * jnp.ones((Cm,), jnp.float32),
                       jnp.zeros((Cm,), jnp.float32),
                       jnp.ones((Cm,), jnp.float32)),
        # feat_combine[1]: Conv2d(2048 -> 2048, k=1, bias=True)
        "combine_1x1_w": 0.05 * jax.random.normal(ks[3], (Cm, Cm, 1, 1), jnp.float32),
        "combine_1x1_b": 0.01 * jax.random.normal(ks[4], (Cm,), jnp.float32),
        # feat_refine[0]: conv_bn_relu(2048 -> 2048, k=3, pad=1, bias=False)
        "refine_conv_w": 0.05 * jax.random.normal(ks[5], (Cm, Cm, 3, 3), jnp.float32),
        "refine_bn": (jnp.ones((Cm,), jnp.float32),
                      jnp.zeros((Cm,), jnp.float32),
                      jnp.zeros((Cm,), jnp.float32),
                      jnp.ones((Cm,), jnp.float32)),
        # stand-in backbone channel projections
        "tsm_proj": 0.1 * jax.random.normal(ks[6], (C_img, C_branch), jnp.float32),
        "det_proj": 0.1 * jax.random.normal(ks[7], (C_img, C_branch), jnp.float32),
    }

    input_data = {"imgs": imgs, "masks": masks}
    # k_tile=384 exercises the multi-step K reduction path (9*Cc=2304 -> 6 steps).
    feature = vfuse_forward(params, input_data, sample_rate=sample_rate,
                            feat_hw=(H, W), k_tile=384)
    feature = jax.block_until_ready(feature)
    assert feature.shape == (B * clip_seg_num, H, W, Cm)

    # correctness check of the Pallas path against a bf16-matched JAX conv reference
    x1 = _standin_backbone(params["tsm_proj"], imgs.reshape((-1,) + imgs.shape[2:]), (H, W))
    x2 = _standin_backbone(params["det_proj"], imgs.reshape((-1,) + imgs.shape[2:]), (H, W))
    bm = masks[:, None, ::sample_rate].reshape(-1)[:, None, None, None]
    ref = _ref_feature_fusion(params, x1 * bm, x2 * bm)
    if not jnp.allclose(feature.astype(jnp.float32), ref.astype(jnp.float32),
                        rtol=2e-2, atol=2e-2):
        raise AssertionError("Pallas feature_fusion mismatch vs reference")

    print("KERNEL_OK")
</pallas_src>

<mosaic_0001>
module attributes {stable_mosaic.version = 11 : i64} {
  func.func @_gemm_scale_bias_act_kernel(%arg0: i32, %arg1: i32, %arg2: memref<512x384xbf16, #tpu.memory_space<vmem>>, %arg3: memref<384x128xbf16, #tpu.memory_space<vmem>>, %arg4: memref<1x128xf32, #tpu.memory_space<vmem>>, %arg5: memref<1x128xf32, #tpu.memory_space<vmem>>, %arg6: memref<512x128xbf16, #tpu.memory_space<vmem>>, %arg7: memref<512x128xf32, #tpu.memory_space<vmem>>) attributes {dimension_semantics = [#tpu.dimension_semantics<parallel>, #tpu.dimension_semantics<arbitrary>], iteration_bounds = array<i64: 1, 6>, scalar_prefetch = 0 : i64, scratch_operands = 1 : i64, tpu.core_type = #tpu.core_type<tc>, window_params = [{transform_indices = @transform_0, window_bounds = array<i64: 512, 384>}, {transform_indices = @transform_1, window_bounds = array<i64: 384, 128>}, {transform_indices = @transform_2, window_bounds = array<i64: 1, 128>}, {transform_indices = @transform_3, window_bounds = array<i64: 1, 128>}, {transform_indices = @transform_4, window_bounds = array<i64: 512, 128>}]} {
    %c0_i32 = arith.constant 0 : i32
    %0 = arith.cmpi eq, %arg1, %c0_i32 : i32
    %1 = arith.extui %0 : i1 to i32
    %c0_i32_0 = arith.constant 0 : i32
    %2 = arith.cmpi ne, %1, %c0_i32_0 : i32
    scf.if %2 {
      %cst_9 = arith.constant 0.000000e+00 : f32
      %12 = vector.broadcast %cst_9 : f32 to vector<512x128xf32>
      %c0_10 = arith.constant 0 : index
      %c0_11 = arith.constant 0 : index
      %13 = vector.load %arg7[%c0_10, %c0_11] : memref<512x128xf32, #tpu.memory_space<vmem>>, vector<512x128xf32>
      tpu.vector_store %arg7[%c0_10, %c0_11], %12 {strides = array<i32>} : memref<512x128xf32, #tpu.memory_space<vmem>>, vector<512x128xf32>,
    } else {
    }
    %c0 = arith.constant 0 : index
    %c0_1 = arith.constant 0 : index
    %3 = vector.load %arg7[%c0, %c0_1] : memref<512x128xf32, #tpu.memory_space<vmem>>, vector<512x128xf32>
    %c0_2 = arith.constant 0 : index
    %c0_3 = arith.constant 0 : index
    %4 = vector.load %arg2[%c0_2, %c0_3] : memref<512x384xbf16, #tpu.memory_space<vmem>>, vector<512x384xbf16>
    %c0_4 = arith.constant 0 : index
    %c0_5 = arith.constant 0 : index
    %5 = vector.load %arg3[%c0_4, %c0_5] : memref<384x128xbf16, #tpu.memory_space<vmem>>, vector<384x128xbf16>
    %cst = arith.constant dense<0.000000e+00> : vector<512x128xf32>
    %6 = tpu.matmul %4, %5, %cst {dimension_numbers = #tpu.dot_dimension_numbers<[1], [0], [0], [1], [0, 0, 1, 1], [], []>} : vector<512x384xbf16>, vector<384x128xbf16>, vector<512x128xf32> -> vector<512x128xf32>
    %7 = arith.addf %3, %6 : vector<512x128xf32>
    %c0_6 = arith.constant 0 : index
    %c0_7 = arith.constant 0 : index
    %8 = vector.load %arg7[%c0_6, %c0_7] : memref<512x128xf32, #tpu.memory_space<vmem>>, vector<512x128xf32>
    tpu.vector_store %arg7[%c0_6, %c0_7], %7 {strides = array<i32>} : memref<512x128xf32, #tpu.memory_space<vmem>>, vector<512x128xf32>,
    %c5_i32 = arith.constant 5 : i32
    %9 = arith.cmpi eq, %arg1, %c5_i32 : i32
    %10 = arith.extui %9 : i1 to i32
    %c0_i32_8 = arith.constant 0 : i32
    %11 = arith.cmpi ne, %10, %c0_i32_8 : i32
    scf.if %11 {
      %c0_9 = arith.constant 0 : index
      %c0_10 = arith.constant 0 : index
      %12 = vector.load %arg7[%c0_9, %c0_10] : memref<512x128xf32, #tpu.memory_space<vmem>>, vector<512x128xf32>
      %c0_11 = arith.constant 0 : index
      %c0_12 = arith.constant 0 : index
      %13 = vector.load %arg4[%c0_11, %c0_12] : memref<1x128xf32, #tpu.memory_space<vmem>>, vector<1x128xf32>
      %14 = vector.broadcast %13 : vector<1x128xf32> to vector<512x128xf32>
      %15 = arith.mulf %12, %14 : vector<512x128xf32>
      %c0_13 = arith.constant 0 : index
      %c0_14 = arith.constant 0 : index
      %16 = vector.load %arg5[%c0_13, %c0_14] : memref<1x128xf32, #tpu.memory_space<vmem>>, vector<1x128xf32>
      %17 = vector.broadcast %16 : vector<1x128xf32> to vector<512x128xf32>
      %18 = arith.addf %15, %17 : vector<512x128xf32>
      %cst_15 = arith.constant 0.000000e+00 : f32
      %19 = vector.broadcast %cst_15 : f32 to vector<512x128xf32>
      %20 = arith.maximumf %18, %19 : vector<512x128xf32>
      %21 = arith.truncf %20 : vector<512x128xf32> to vector<512x128xbf16>
      %c0_16 = arith.constant 0 : index
      %c0_17 = arith.constant 0 : index
      %22 = vector.load %arg6[%c0_16, %c0_17] : memref<512x128xbf16, #tpu.memory_space<vmem>>, vector<512x128xbf16>
      tpu.vector_store %arg6[%c0_16, %c0_17], %21 {strides = array<i32>} : memref<512x128xbf16, #tpu.memory_space<vmem>>, vector<512x128xbf16>,
    } else {
    }
    return
  }
  func.func @transform_0(%arg0: i32, %arg1: i32) -> (i32, i32) {
    %c0_i32 = arith.constant 0 : i32
    %c0_i32_0 = arith.constant 0 : i32
    return %c0_i32, %arg1 : i32, i32
  }
  func.func @transform_1(%arg0: i32, %arg1: i32) -> (i32, i32) {
    %c0_i32 = arith.constant 0 : i32
    return %arg1, %arg0 : i32, i32
  }
  func.func @transform_2(%arg0: i32, %arg1: i32) -> (i32, i32) {
    %c0_i32 = arith.constant 0 : i32
    %c0_i32_0 = arith.constant 0 : i32
    return %c0_i32, %arg0 : i32, i32
  }
  func.func @transform_3(%arg0: i32, %arg1: i32) -> (i32, i32) {
    %c0_i32 = arith.constant 0 : i32
    %c0_i32_0 = arith.constant 0 : i32
    return %c0_i32, %arg0 : i32, i32
  }
  func.func @transform_4(%arg0: i32, %arg1: i32) -> (i32, i32) {
    %c0_i32 = arith.constant 0 : i32
    %c0_i32_0 = arith.constant 0 : i32
    return %c0_i32, %arg0 : i32, i32
  }
}

</mosaic_0001>

<bundles_post_ra>
// kernel: tpu_custom_call.1
= control target key start
LH: loop header
LB: loop body
LE: loop exit
PB: predicated region body
PF: predicated region fallthrough
CT: control target
= control target key end

     0   :  { %s4537_s0 = inlined_call_operand.hbm [shape: bf16[512,2304], index: 0, kind: input, shape index: {}]   ;;  %s4538_s1 = inlined_call_operand.hbm [shape: bf16[2304,128], index: 1, kind: input, shape index: {}]   ;;  %s4539_s2 = inlined_call_operand.hbm [shape: f32[1,128], index: 2, kind: input, shape index: {}]   ;;  %s4540_s3 = inlined_call_operand.hbm [shape: f32[1,128], index: 3, kind: input, shape index: {}]   ;;  %s4541_s4 = inlined_call_operand.hbm [shape: bf16[512,128], index: 4, kind: output, shape index: {}]  }
   0x1   :  { %4546 = sst [smem:[#allocation17_spill]] %s4537_s0 }
   0x2   :  { %4547 = sst [smem:[#allocation18_spill]] %s4539_s2 }
   0x3   :  { %9 = vsyncpa [#allocation4], 0 }
   0x4   :  { %11 = vsyncpa [#allocation4 + $0x1], 0 }
   0x5   :  { %12 = vsyncpa [#allocation7], 0 }
   0x6   :  { %14 = vsyncpa [#allocation7 + $0x1], 0 }
   0x7   :  { %15 = vsyncpa [#allocation10], 0 }
   0x8   :  { %16 = vsyncpa [#allocation5], 0  ;;  %s3803_s15 = smov 0   ;;  %s3805_s16 = smov 0  }
   0x9   :  { %s3807_s17 = smov 0   ;;  %s3809_s18 = smov 0  }
   0xa   :  { %s3811_s19 = smov 0   ;;  %s3813_s20 = smov 0  }
   0xb LB: > { %s3832_s21 = sadd.s32 4294967295, %s3762_s20   ;;  %s41_s22 = sadd.s32 1, %s3750_s17  ;;  %s3762_s20 = sphi %s3813_s20, %s22_s20   ;;  %s3758_s19 = sphi %s3811_s19, %s4565_s19   ;;  %s3754_s18 = sphi %s3809_s18, %s4564_s18   ;;  %s3750_s17 = sphi %s3807_s17, %s4563_s17   ;;  %s3746_s16 = sphi %s3805_s16, %s4562_s16   ;;  %s3742_s15 = sphi %s3803_s15, %s4561_s15  }
   0xc   : > { %p48_p0 = scmp.ne.s32.totalorder %s3750_s17, %s3746_s16  ;;  %p49_p1 = scmp.eq.s32.totalorder %s3762_s20, 0 }
   0xd   : > { %p54_p2 = scmp.ne.s32.totalorder %s3746_s16, %s3742_s15  ;;  %p4542_p3 = scmp.eq.s32.totalorder %s3832_s21, 0 }
   0xe   : > { %p50_p4 = por %p49_p1, %p48_p0  ;;  %p2691_p5 = scmp.ge.s32.totalorder %s3762_s20, 1 }
   0xf   : > { %p3843_p6 = por %p4542_p3, %p54_p2  ;;  %p171_p7 = scmp.lt.s32.totalorder %s3762_s20, 7 }
  0x10   : > { %s3764_s25 = smov [#allocation8]   ;;  %p3337_p10 = scmp.lt.s32.totalorder %s3762_s20, 6 }
  0x11   : > { %s4548_s23 = scalar_select %p3843_p6, 1, 0 }
  0x12   : > { %p3848_p8 = pnand %p2691_p5, %p171_p7  ;;  %s186_s26 = sshll.u32 %s3764_s25, 4  ;;  %s187_s26 = int_to_ptr.vmem [resolvable:$true] %s186_s26 }
  0x13   : > { %p3861_p12 = pnand %p3337_p10, %p50_p4  ;;  %s3765_s29 = smov [#allocation9]  }
  0x14   : > { %s4549_s24 = scalar_select %p3848_p8, 1, 0 }
  0x15   : > { %p3321_p9 = pneg %p3848_p8  ;;  %s199_s30 = sshll.u32 %s3765_s29, 4  ;;  %s200_s30 = int_to_ptr.vmem [resolvable:$true] %s199_s30 }
  0x16   : > { %s4551_s28 = scalar_select %p3861_p12, 1, 0 }
  0x17   : > { %p3857_p11 = pnand %p3321_p9, %p4542_p3  ;;  %s4552_s2 = sld [smem:[#allocation18_spill]] }
  0x19   : > { %p3556_p0 = pneg %p3857_p11 }
  0x1d   : > { %s3554_s7 = scalar_lea.hbm %s4552_s2, 16 }
  0x1e   : > { %p3555_p13 = scmp.ne.s32.totalorder %s4552_s2, %s3554_s7  ;;  %p3561_p4 = scmp.lt.u32.totalorder %s3554_s7, %s4552_s2 }
  0x20   : > { %p3557_p1 = pnand %p3556_p0, %p3555_p13 }
  0x22   : > { %p3558_p2 = pneg %p3557_p1 }
  0x24   : > { %p3563_p5 = pnand %p3561_p4, %p3558_p2 }
  0x26   : > { %3566 = shalt.err (!%p3563_p5)
}
  0x27   : > { %s3567_s12 = scalar_lea.vmem %s187_s26, 16  ;;  %s3574_s13 = scalar_lea.vmem %s187_s26, 32 }
  0x28   : > { %p3568_p7 = scmp.ne.s32.totalorder %s187_s26, %s3567_s12  ;;  %p3575_p3 = scmp.lt.s32.totalorder %s187_s26, %s187_s26 }
  0x29   : > { %p3576_p6 = scmp.lt.s32.totalorder %s3574_s13, %s3567_s12 }
  0x2a   : > { %p3570_p9 = pnand %p3568_p7, %p3556_p0 }
  0x2b   : > { %p3577_p8 = por %p3576_p6, %p3575_p3 }
  0x2c   : > { %p3571_p10 = pneg %p3570_p9 }
  0x2e   : > { %p3578_p12 = pnand %p3577_p8, %p3571_p10 }
  0x30   : > { %3581 = shalt.err (!%p3578_p12)
}
  0x31   : > { %3324 = dma.hbm_to_vmem [thread:$0]  (!%p3857_p11), %s4552_s2, 16, %s187_s26, [#allocation7]  }
  0x32   : > { %s31_s25 = sadd.s32 1, %s3758_s19  ;;  %s3582_s6 = scalar_lea.hbm %s4540_s3, 16 }
  0x33   : > { %p3583_p3 = scmp.ne.s32.totalorder %s4540_s3, %s3582_s6  ;;  %p3589_p12 = scmp.lt.u32.totalorder %s3582_s6, %s4540_s3 }
  0x35   : > { %p3585_p6 = pnand %p3583_p3, %p3556_p0 }
  0x37   : > { %p3586_p8 = pneg %p3585_p6 }
  0x39   : > { %p3591_p13 = pnand %p3589_p12, %p3586_p8 }
  0x3b   : > { %3594 = shalt.err (!%p3591_p13)
}
  0x3c   : > { %s3595_s26 = scalar_lea.vmem %s200_s30, 16  ;;  %s3602_s11 = scalar_lea.vmem %s200_s30, 32 }
  0x3d   : > { %p3596_p1 = scmp.ne.s32.totalorder %s200_s30, %s3595_s26  ;;  %p3603_p5 = scmp.lt.s32.totalorder %s200_s30, %s200_s30 }
  0x3e   : > { %p3604_p7 = scmp.lt.s32.totalorder %s3602_s11, %s3595_s26 }
  0x3f   : > { %p3598_p2 = pnand %p3596_p1, %p3556_p0 }
  0x40   : > { %p3605_p9 = por %p3604_p7, %p3603_p5 }
  0x41   : > { %p3599_p4 = pneg %p3598_p2 }
  0x43   : > { %p3606_p10 = pnand %p3605_p9, %p3599_p4 }
  0x45   : > { %3609 = shalt.err (!%p3606_p10)
}
  0x46   : > { %3327 = dma.hbm_to_vmem [thread:$0]  (!%p3857_p11), %s4540_s3, 16, %s200_s30, [#allocation10]  }
  0x47   : > { %p32_p0 = scmp.ge.s32.totalorder %s31_s25, 6  ;;  %s3909_s14 = sand.u32 1, %s3750_s17  }
  0x48   : > { %s3301_s15 = smul.u32 768, %s3909_s14  ;;  %s4553_s0 = sld [smem:[#allocation17_spill]] }
  0x49   : > { %s4567_s25 = smov (%p32_p0, %s31_s25), 0  ;;  %s2892_s27 = smul.u32 192, %s3758_s19 }
  0x4a   : > { %s38_s29 = ssub.s32 %s3758_s19, %s4567_s25  ;;  %s214_s5 = scalar_lea.vmem [#allocation3], %s3301_s15 }
  0x4b   : > { %s221_s6 = sshll.u32 %s214_s5, 4  ;;  %p39_p3 = scmp.eq.s32.totalorder %s38_s29, 0  ;;  %s3922_s6 = int_to_ptr.vmem [resolvable:$true] %s221_s6 }
  0x4c   : > { %s211_s10 = scalar_lea.sflag [#allocation4], %s3909_s14  ;;  %p4554_p6 = scmp.ne.s32.totalorder %s4551_s28, 0 }
  0x4d   : > { %s3927_s9 = scalar_select %p39_p3, %s3750_s17, %s41_s22  }
  0x4e   : > { %s3920_s30 = scalar_lea.hbm %s4553_s0, %s2892_s27  ;;  %p3612_p8 = pneg %p4554_p6 }
  0x4f   : > { %s3610_s26 = scalar_lea.hbm %s3920_s30, 12288  ;;  %s3615_s13 = scalar_lea.hbm %s4553_s0, 73728 }
  0x50   : > { %p3611_p11 = scmp.ne.s32.totalorder %s3920_s30, %s3610_s26  ;;  %p3616_p1 = scmp.lt.u32.totalorder %s3920_s30, %s4553_s0 }
  0x51   : > { %p3617_p2 = scmp.lt.u32.totalorder %s3615_s13, %s3610_s26  ;;  %p3619_p5 = scmp.lt.u32.totalorder %s3610_s26, %s3920_s30 }
  0x52   : > { %p3613_p12 = pnand %p3612_p8, %p3611_p11 }
  0x53   : > { %p3618_p4 = por %p3617_p2, %p3616_p1 }
  0x54   : > { %p3614_p13 = pneg %p3613_p12 }
  0x55   : > { %p3620_p7 = por %p3619_p5, %p3618_p4 }
  0x57   : > { %p3621_p9 = pnand %p3620_p7, %p3614_p13 }
  0x59   : > { %3624 = shalt.err (!%p3621_p9)
}
  0x5a   : > { %s3625_s22 = scalar_lea.vmem %s3922_s6, 12288  ;;  %s3766_s29 = smov [#allocation3]  }
  0x5b   : > { %p3626_p10 = scmp.ne.s32.totalorder %s3922_s6, %s3625_s22  ;;  %s3630_s5 = sshll.u32 %s3766_s29, 4  ;;  %s3631_s5 = int_to_ptr.vmem [resolvable:$false] %s3630_s5 }
  0x5c   : > { %s3632_s7 = scalar_lea.vmem %s3631_s5, 24576  ;;  %p3633_p11 = scmp.lt.s32.totalorder %s3922_s6, %s3631_s5 }
  0x5d   : > { %p3628_p0 = pnand %p3626_p10, %p3612_p8  ;;  %p3634_p12 = scmp.lt.s32.totalorder %s3632_s7, %s3625_s22 }
  0x5f   : > { %p3629_p3 = pneg %p3628_p0  ;;  %p3635_p1 = por %p3634_p12, %p3633_p11 }
  0x61   : > { %p3636_p2 = pnand %p3635_p1, %p3629_p3 }
  0x63   : > { %3639 = shalt.err (!%p3636_p2)
}
  0x64   : > { %s3767_s8 = smov 1152   ;;  %s3768_s26 = smov 192  }
  0x65   : > { %s3769_s11 = smov 12   ;;  %s231_s12 = sand.u32 1, %s3762_s20  }
  0x66   : > { %3331 = dma.hbm_to_vmem [thread:$0]  (!%p4554_p6), %s3920_s30, 12288, %s3922_s6, %s211_s10, %s3767_s8, %s3768_s26, %s3769_s11  }
  0x67   : > { %s3302_s13 = smul.u32 192, %s3909_s14  ;;  %s3967_s0 = scalar_lea.sflag [#allocation7], %s231_s12 }
  0x68   : > { %s2893_s15 = smul.u32 3072, %s3758_s19  ;;  %s3645_s30 = scalar_lea.hbm %s4538_s1, 18432 }
  0x69   : > { %s235_s5 = scalar_lea.vmem [#allocation6], %s3302_s13 }
  0x6a   : > { %s3963_s29 = scalar_lea.hbm %s4538_s1, %s2893_s15  ;;  %s243_s7 = sshll.u32 %s235_s5, 4  ;;  %s3965_s7 = int_to_ptr.vmem [resolvable:$true] %s243_s7 }
  0x6b   : > { %s3640_s2 = scalar_lea.hbm %s3963_s29, 3072  ;;  %p3646_p7 = scmp.lt.u32.totalorder %s3963_s29, %s4538_s1 }
  0x6c   : > { %p3641_p13 = scmp.ne.s32.totalorder %s3963_s29, %s3640_s2  ;;  %p3647_p9 = scmp.lt.u32.totalorder %s3645_s30, %s3640_s2 }
  0x6d   : > { %p3649_p0 = scmp.lt.u32.totalorder %s3640_s2, %s3963_s29 }
  0x6e   : > { %p3643_p4 = pnand %p3641_p13, %p3612_p8  ;;  %p3648_p10 = por %p3647_p9, %p3646_p7 }
  0x70   : > { %p3644_p5 = pneg %p3643_p4  ;;  %p3650_p3 = por %p3649_p0, %p3648_p10 }
  0x72   : > { %p3651_p11 = pnand %p3650_p3, %p3644_p5 }
  0x74   : > { %3654 = shalt.err (!%p3651_p11)
}
  0x75   : > { %s3655_s26 = scalar_lea.vmem %s3965_s7, 3072  ;;  %s3770_s11 = smov [#allocation6]  }
  0x76   : > { %p3656_p12 = scmp.ne.s32.totalorder %s3965_s7, %s3655_s26  ;;  %s3660_s12 = sshll.u32 %s3770_s11, 4  ;;  %s3661_s12 = int_to_ptr.vmem [resolvable:$false] %s3660_s12 }
  0x77   : > { %s3662_s13 = scalar_lea.vmem %s3661_s12, 6144  ;;  %p3663_p13 = scmp.lt.s32.totalorder %s3965_s7, %s3661_s12 }
  0x78   : > { %p3658_p1 = pnand %p3656_p12, %p3612_p8  ;;  %p3664_p4 = scmp.lt.s32.totalorder %s3662_s13, %s3655_s26 }
  0x7a   : > { %p3659_p2 = pneg %p3658_p1  ;;  %p3665_p7 = por %p3664_p4, %p3663_p13 }
  0x7c   : > { %p3666_p9 = pnand %p3665_p7, %p3659_p2 }
  0x7e   : > { %3669 = shalt.err (!%p3666_p9)
}
  0x7f   : > { %s3771_s2 = smov 64   ;;  %s3772_s15 = smov 4  }
  0x80   : > { %3334 = dma.hbm_to_vmem [thread:$0]  (!%p4554_p6), %s3963_s29, 3072, %s3965_s7, %s3967_s0, %s3771_s2, %s3771_s2, %s3772_s15  }
  0x81   : > { %p4555_p8 = scmp.ne.s32.totalorder %s4549_s24, 0 }
  0x82   : > { %s257_s27 = sand.u32 (!%p4555_p8), 1, %s3746_s16   ;;  %p4556_p5 = scmp.ne.s32.totalorder (!%p4555_p8), %s4548_s23, 0 }
  0x83   : > { %255 = sbr.rel (%p4555_p8) target bundleno = 730 (0x2da), region = 36  ;;  %s258_s5 = scalar_lea.sflag (!%p4555_p8), [#allocation4], %s257_s27 }
  0x84   : > { %s3303_s22 = smul.u32 (!%p4555_p8), 768, %s257_s27 }
  0x86   : > { %s3996_s14 = scalar_lea.vmem (!%p4555_p8), [#allocation3], %s3303_s22 }
  0x8a   : > { %3721 = dma.done.wait (%p4556_p5), %s258_s5, 12288  }
  0x8b   : > { %3723 = vsyncadd (%p4556_p5), %s258_s5, 4294955008  ;;  %s266_s6 = sand.u32 1, %s3832_s21   ;;  %s3304_s28 = smul.u32 192, %s257_s27 }
  0x8c   : > { %s267_s0 = scalar_lea.sflag [#allocation7], %s266_s6 }
  0x8d   : > { %s4003_s29 = scalar_lea.vmem [#allocation6], %s3304_s28 }
  0x8e   : > { %3725 = dma.done.wait (%p4556_p5), %s267_s0, 3072  }
  0x8f   : > { %3727 = vsyncadd (%p4556_p5), %s267_s0, 4294964224  ;;  %p4557_p6 = scmp.eq.s32.totalorder %s3832_s21, 0 }
  0x91   : > { %3729 = dma.done.wait (%p4557_p6), [#allocation7], 16   ;;  %p4558_p10 = pmov %p4557_p6 }
  0x92   : > { %p4559_p0 = pmov %p4557_p6 }
  0x93   : > { %3731 = vsyncadd (%p4558_p10), [#allocation7], 4294967280 }
  0x94   : > { %3733 = dma.done.wait (%p4559_p0), [#allocation10], 16   ;;  %p4560_p3 = pmov %p4559_p0 }
  0x95   : > { %p2700_p11 = scmp.ne.s32.totalorder %s3754_s18, 0 }
  0x96   : > { %3735 = vsyncadd (%p4560_p3), [#allocation10], 4294967280  ;;  %v3773_v0 = vmov (!%p2700_p11), 0.0  }
  0x97   : > { %309 = sbr.rel (%p2700_p11) target bundleno = 183 (0xb7), region = 56  ;;  %310 = vst [vmem:[#allocation2] sm:$0xff] (!%p2700_p11), %v3773_v0  ;;  %311 = vst [vmem:[#allocation2 + $0x8] sm:$0xff] (!%p2700_p11), %v3773_v0 }
  0x98   : > { %312 = vst [vmem:[#allocation2 + $0x10] sm:$0xff] (!%p2700_p11), %v3773_v0  ;;  %313 = vst [vmem:[#allocation2 + $0x18] sm:$0xff] (!%p2700_p11), %v3773_v0 }
  0x99   : > { %314 = vst [vmem:[#allocation2 + $0x20] sm:$0xff] (!%p2700_p11), %v3773_v0  ;;  %315 = vst [vmem:[#allocation2 + $0x28] sm:$0xff] (!%p2700_p11), %v3773_v0 }
  0x9a   : > { %316 = vst [vmem:[#allocation2 + $0x30] sm:$0xff] (!%p2700_p11), %v3773_v0  ;;  %317 = vst [vmem:[#allocation2 + $0x38] sm:$0xff] (!%p2700_p11), %v3773_v0 }
  0x9b   : > { %318 = vst [vmem:[#allocation2 + $0x40] sm:$0xff] (!%p2700_p11), %v3773_v0  ;;  %319 = vst [vmem:[#allocation2 + $0x48] sm:$0xff] (!%p2700_p11), %v3773_v0 }
  0x9c   : > { %320 = vst [vmem:[#allocation2 + $0x50] sm:$0xff] (!%p2700_p11), %v3773_v0  ;;  %321 = vst [vmem:[#allocation2 + $0x58] sm:$0xff] (!%p2700_p11), %v3773_v0 }
  0x9d   : > { %322 = vst [vmem:[#allocation2 + $0x60] sm:$0xff] (!%p2700_p11), %v3773_v0  ;;  %323 = vst [vmem:[#allocation2 + $0x68] sm:$0xff] (!%p2700_p11), %v3773_v0 }
  0x9e   : > { %324 = vst [vmem:[#allocation2 + $0x70] sm:$0xff] %v3773_v0  ;;  %325 = vst [vmem:[#allocation2 + $0x78] sm:$0xff] %v3773_v0 }
  0x9f   : > { %326 = vst [vmem:[#allocation2 + $0x80] sm:$0xff] %v3773_v0  ;;  %327 = vst [vmem:[#allocation2 + $0x88] sm:$0xff] %v3773_v0 }
  0xa0   : > { %328 = vst [vmem:[#allocation2 + $0x90] sm:$0xff] %v3773_v0  ;;  %329 = vst [vmem:[#allocation2 + $0x98] sm:$0xff] %v3773_v0 }
  0xa1   : > { %330 = vst [vmem:[#allocation2 + $0xa0] sm:$0xff] %v3773_v0  ;;  %331 = vst [vmem:[#allocation2 + $0xa8] sm:$0xff] %v3773_v0 }
  0xa2   : > { %332 = vst [vmem:[#allocation2 + $0xb0] sm:$0xff] %v3773_v0  ;;  %333 = vst [vmem:[#allocation2 + $0xb8] sm:$0xff] %v3773_v0 }
  0xa3   : > { %334 = vst [vmem:[#allocation2 + $0xc0] sm:$0xff] %v3773_v0  ;;  %335 = vst [vmem:[#allocation2 + $0xc8] sm:$0xff] %v3773_v0 }
  0xa4   : > { %336 = vst [vmem:[#allocation2 + $0xd0] sm:$0xff] %v3773_v0  ;;  %337 = vst [vmem:[#allocation2 + $0xd8] sm:$0xff] %v3773_v0 }
  0xa5   : > { %338 = vst [vmem:[#allocation2 + $0xe0] sm:$0xff] %v3773_v0  ;;  %339 = vst [vmem:[#allocation2 + $0xe8] sm:$0xff] %v3773_v0 }
  0xa6   : > { %340 = vst [vmem:[#allocation2 + $0xf0] sm:$0xff] %v3773_v0  ;;  %341 = vst [vmem:[#allocation2 + $0xf8] sm:$0xff] %v3773_v0 }
  0xa7   : > { %342 = vst [vmem:[#allocation2 + $0x100] sm:$0xff] %v3773_v0  ;;  %343 = vst [vmem:[#allocation2 + $0x108] sm:$0xff] %v3773_v0 }
  0xa8   : > { %344 = vst [vmem:[#allocation2 + $0x110] sm:$0xff] %v3773_v0  ;;  %345 = vst [vmem:[#allocation2 + $0x118] sm:$0xff] %v3773_v0 }
  0xa9   : > { %346 = vst [vmem:[#allocation2 + $0x120] sm:$0xff] %v3773_v0  ;;  %347 = vst [vmem:[#allocation2 + $0x128] sm:$0xff] %v3773_v0 }
  0xaa   : > { %348 = vst [vmem:[#allocation2 + $0x130] sm:$0xff] %v3773_v0  ;;  %349 = vst [vmem:[#allocation2 + $0x138] sm:$0xff] %v3773_v0 }
  0xab   : > { %350 = vst [vmem:[#allocation2 + $0x140] sm:$0xff] %v3773_v0  ;;  %351 = vst [vmem:[#allocation2 + $0x148] sm:$0xff] %v3773_v0 }
  0xac   : > { %352 = vst [vmem:[#allocation2 + $0x150] sm:$0xff] %v3773_v0  ;;  %353 = vst [vmem:[#allocation2 + $0x158] sm:$0xff] %v3773_v0 }
  0xad   : > { %354 = vst [vmem:[#allocation2 + $0x160] sm:$0xff] %v3773_v0  ;;  %355 = vst [vmem:[#allocation2 + $0x168] sm:$0xff] %v3773_v0 }
  0xae   : > { %356 = vst [vmem:[#allocation2 + $0x170] sm:$0xff] %v3773_v0  ;;  %357 = vst [vmem:[#allocation2 + $0x178] sm:$0xff] %v3773_v0 }
  0xaf   : > { %358 = vst [vmem:[#allocation2 + $0x180] sm:$0xff] %v3773_v0  ;;  %359 = vst [vmem:[#allocation2 + $0x188] sm:$0xff] %v3773_v0 }
  0xb0   : > { %360 = vst [vmem:[#allocation2 + $0x190] sm:$0xff] %v3773_v0  ;;  %361 = vst [vmem:[#allocation2 + $0x198] sm:$0xff] %v3773_v0 }
  0xb1   : > { %362 = vst [vmem:[#allocation2 + $0x1a0] sm:$0xff] %v3773_v0  ;;  %363 = vst [vmem:[#allocation2 + $0x1a8] sm:$0xff] %v3773_v0 }
  0xb2   : > { %364 = vst [vmem:[#allocation2 + $0x1b0] sm:$0xff] %v3773_v0  ;;  %365 = vst [vmem:[#allocation2 + $0x1b8] sm:$0xff] %v3773_v0 }
  0xb3   : > { %366 = vst [vmem:[#allocation2 + $0x1c0] sm:$0xff] %v3773_v0  ;;  %367 = vst [vmem:[#allocation2 + $0x1c8] sm:$0xff] %v3773_v0 }
  0xb4   : > { %368 = vst [vmem:[#allocation2 + $0x1d0] sm:$0xff] %v3773_v0  ;;  %369 = vst [vmem:[#allocation2 + $0x1d8] sm:$0xff] %v3773_v0 }
  0xb5   : > { %370 = vst [vmem:[#allocation2 + $0x1e0] sm:$0xff] %v3773_v0  ;;  %371 = vst [vmem:[#allocation2 + $0x1e8] sm:$0xff] %v3773_v0 }
  0xb6   : > { %372 = vst [vmem:[#allocation2 + $0x1f0] sm:$0xff] %v3773_v0  ;;  %373 = vst [vmem:[#allocation2 + $0x1f8] sm:$0xff] %v3773_v0 }
  0xb7 PF: > { %v3402_v1 = vld [vmem:[%s4003_s29] sm:$0xff]   ;;  %v3774_v2 = vmov 0   ;;  %v3403_v3 = vld [vmem:[%s4003_s29 + $0x8] sm:$0xff]   ;;  %v3404_v4 = vld [vmem:[%s4003_s29 + $0x10] sm:$0xff]   ;;  %p2821_p12 = scmp.ne.s32.totalorder %s3754_s18, 5 }
  0xb8   : > { %1270 = vmatprep.subr.bf16.mxu0 %v3774_v2  ;;  %3269 = vmatprep.subr.bf16.mxu1 %v3774_v2  ;;  %v3405_v5 = vld [vmem:[%s4003_s29 + $0x18] sm:$0xff]   ;;  %v3406_v6 = vld [vmem:[%s4003_s29 + $0x20] sm:$0xff]   ;;  %v3407_v8 = vld [vmem:[%s4003_s29 + $0x28] sm:$0xff]  }
  0xb9   : > { %1271 = vmatpush1.bf16.msra.mxu0 %v3402_v1  ;;  %3285 = vmatpush1.bf16.msra.mxu1 %v3402_v1  ;;  %v3420_v7 = vld [vmem:[%s3996_s14 + $0x4] ss:$12 sps:$4 sm:$0xff]   ;;  %v3409_v11 = vld [vmem:[%s4003_s29 + $0x38] sm:$0xff]   ;;  %v3411_v13 = vld [vmem:[%s4003_s29 + $0x48] sm:$0xff]  }
  0xba   : > { %1272 = vmatprep.subr.bf16.mxu0 %v3774_v2  ;;  %3270 = vmatprep.subr.bf16.mxu1 %v3774_v2  ;;  %v3423_v9 = vld [vmem:[%s3996_s14 + $0x244] ss:$12 sps:$4 sm:$0xff]   ;;  %v3413_v15 = vld [vmem:[%s4003_s29 + $0x58] sm:$0xff]   ;;  %v3415_v17 = vld [vmem:[%s4003_s29 + $0x68] sm:$0xff]  }
  0xbb   : > { %1302 = vmatprep.mubr.bf16.mxu0 %v3420_v7  ;;  %1494 = vmatprep.mubr.bf16.mxu1 %v3423_v9  ;;  %v3408_v10 = vld [vmem:[%s4003_s29 + $0x30] sm:$0xff]   ;;  %v3410_v12 = vld [vmem:[%s4003_s29 + $0x40] sm:$0xff]   ;;  %v3417_v19 = vld [vmem:[%s4003_s29 + $0x78] sm:$0xff]  }
  0xbc   : > { %v3412_v14 = vld [vmem:[%s4003_s29 + $0x50] sm:$0xff]   ;;  %v3414_v16 = vld [vmem:[%s4003_s29 + $0x60] sm:$0xff]   ;;  %v3425_v23 = vld [vmem:[%s3996_s14 + $0x1c] ss:$12 sps:$4 sm:$0xff]  }
  0xbd   : > { %1273 = vmatpush1.bf16.msra.mxu0 %v3403_v3  ;;  %3286 = vmatpush1.bf16.msra.mxu1 %v3403_v3  ;;  %v3416_v18 = vld [vmem:[%s4003_s29 + $0x70] sm:$0xff]   ;;  %v3424_v20 = vld [vmem:[%s4003_s29 + $0x80] sm:$0xff]   ;;  %v3427_v24 = vld [vmem:[%s3996_s14 + $0x25c] ss:$12 sps:$4 sm:$0xff]  }
  0xbe   : > { %1274 = vmatprep.subr.bf16.mxu0 %v3774_v2  ;;  %3271 = vmatprep.subr.bf16.mxu1 %v3774_v2  ;;  %v3418_v21 = vld [vmem:[%s3996_s14] ss:$12 sps:$4 sm:$0xff]   ;;  %v3438_v26 = vld [vmem:[%s4003_s29 + $0x90] sm:$0xff]   ;;  %v3429_v27 = vld [vmem:[%s3996_s14 + $0x18] ss:$12 sps:$4 sm:$0xff]  }
  0xbf   : > { %v3421_v22 = vld [vmem:[%s3996_s14 + $0x240] ss:$12 sps:$4 sm:$0xff]   ;;  %v3430_v28 = vld [vmem:[%s3996_s14 + $0x258] ss:$12 sps:$4 sm:$0xff]   ;;  %v3436_v32 = vld [vmem:[%s3996_s14 + $0x30] ss:$12 sps:$4 sm:$0xff]  }
  0xc0   : > { %v3431_v25 = vld [vmem:[%s4003_s29 + $0x88] sm:$0xff]   ;;  %v3432_v29 = vld [vmem:[%s3996_s14 + $0x34] ss:$12 sps:$4 sm:$0xff]   ;;  %v3445_v31 = vld [vmem:[%s4003_s29 + $0x98] sm:$0xff]  }
  0xc1   : > { %1275 = vmatpush1.bf16.msra.mxu0 %v3404_v4  ;;  %3287 = vmatpush1.bf16.msra.mxu1 %v3404_v4  ;;  %v3434_v30 = vld [vmem:[%s3996_s14 + $0x274] ss:$12 sps:$4 sm:$0xff]   ;;  %v3437_v34 = vld [vmem:[%s3996_s14 + $0x270] ss:$12 sps:$4 sm:$0xff]   ;;  %v3439_v35 = vld [vmem:[%s3996_s14 + $0x4c] ss:$12 sps:$4 sm:$0xff]  }
  0xc2   : > { %1276 = vmatprep.subr.bf16.mxu0 %v3774_v2  ;;  %3272 = vmatprep.subr.bf16.mxu1 %v3774_v2  ;;  %v3452_v33 = vld [vmem:[%s4003_s29 + $0xa0] sm:$0xff]   ;;  %v3441_v36 = vld [vmem:[%s3996_s14 + $0x28c] ss:$12 sps:$4 sm:$0xff]   ;;  %v3443_v38 = vld [vmem:[%s3996_s14 + $0x48] ss:$12 sps:$4 sm:$0xff]  }
  0xc3   : > { %v3459_v37 = vld [vmem:[%s4003_s29 + $0xa8] sm:$0xff]   ;;  %v3446_v40 = vld [vmem:[%s3996_s14 + $0x64] ss:$12 sps:$4 sm:$0xff]   ;;  %v3473_v43 = vld [vmem:[%s4003_s29 + $0xb8] sm:$0xff]  }
  0xc4   : > { %v3444_v39 = vld [vmem:[%s3996_s14 + $0x288] ss:$12 sps:$4 sm:$0xff]   ;;  %v3448_v41 = vld [vmem:[%s3996_s14 + $0x2a4] ss:$12 sps:$4 sm:$0xff]   ;;  %v3450_v44 = vld [vmem:[%s3996_s14 + $0x60] ss:$12 sps:$4 sm:$0xff]  }
  0xc5   : > { %1277 = vmatpush1.bf16.msra.mxu0 %v3405_v5  ;;  %3288 = vmatpush1.bf16.msra.mxu1 %v3405_v5  ;;  %v3466_v42 = vld [vmem:[%s4003_s29 + $0xb0] sm:$0xff]   ;;  %v3451_v45 = vld [vmem:[%s3996_s14 + $0x2a0] ss:$12 sps:$4 sm:$0xff]   ;;  %v3453_v46 = vld [vmem:[%s3996_s14 + $0x7c] ss:$12 sps:$4 sm:$0xff]  }
  0xc6   : > { %1278 = vmatprep.subr.bf16.mxu0 %v3774_v2  ;;  %3273 = vmatprep.subr.bf16.mxu1 %v3774_v2  ;;  %v3455_v47 = vld [vmem:[%s3996_s14 + $0x2bc] ss:$12 sps:$4 sm:$0xff]   ;;  %v3457_v48 = vld [vmem:[%s3996_s14 + $0x78] ss:$12 sps:$4 sm:$0xff]   ;;  %v3460_v50 = vld [vmem:[%s3996_s14 + $0x94] ss:$12 sps:$4 sm:$0xff]  }
  0xc7   : > { %v3458_v49 = vld [vmem:[%s3996_s14 + $0x2b8] ss:$12 sps:$4 sm:$0xff]   ;;  %v3462_v51 = vld [vmem:[%s3996_s14 + $0x2d4] ss:$12 sps:$4 sm:$0xff]   ;;  %v3464_v52 = vld [vmem:[%s3996_s14 + $0x90] ss:$12 sps:$4 sm:$0xff]  }
  0xc8   : > { %v3465_v53 = vld [vmem:[%s3996_s14 + $0x2d0] ss:$12 sps:$4 sm:$0xff]   ;;  %v3467_v54 = vld [vmem:[%s3996_s14 + $0xac] ss:$12 sps:$4 sm:$0xff]   ;;  %v3471_v56 = vld [vmem:[%s3996_s14 + $0xa8] ss:$12 sps:$4 sm:$0xff]  }
  0xc9   : > { %1279 = vmatpush1.bf16.msra.mxu0 %v3406_v6  ;;  %3289 = vmatpush1.bf16.msra.mxu1 %v3406_v6  ;;  %v3469_v55 = vld [vmem:[%s3996_s14 + $0x2ec] ss:$12 sps:$4 sm:$0xff]   ;;  %v3472_v57 = vld [vmem:[%s3996_s14 + $0x2e8] ss:$12 sps:$4 sm:$0xff]   ;;  %v3474_v58 = vld [vmem:[%s3996_s14 + $0xc4] ss:$12 sps:$4 sm:$0xff]  }
  0xca   : > { %1280 = vmatprep.subr.bf16.mxu0 %v3774_v2  ;;  %3274 = vmatprep.subr.bf16.mxu1 %v3774_v2  ;;  %v3476_v59 = vld [vmem:[%s3996_s14 + $0x8] ss:$12 sps:$4 sm:$0xff]   ;;  %v3477_v60 = vld [vmem:[%s3996_s14 + $0xc0] ss:$12 sps:$4 sm:$0xff]   ;;  %v3481_v63 = vld [vmem:[%s3996_s14 + $0x38] ss:$12 sps:$4 sm:$0xff]  }
  0xcb   : > { %v3478_v61 = vld [vmem:[%s3996_s14 + $0x20] ss:$12 sps:$4 sm:$0xff]   ;;  %v3479_v62 = vld [vmem:[%s3996_s14 + $0xdc] ss:$12 sps:$4 sm:$0xff]   ;;  %v3482_v0 = vld [vmem:[%s3996_s14 + $0xd8] ss:$12 sps:$4 sm:$0xff]  }
  0xcc   : > { %v3483_v1 = vld [vmem:[%s3996_s14 + $0x50] ss:$12 sps:$4 sm:$0xff]   ;;  %v3486_v3 = vld [vmem:[%s3996_s14 + $0x68] ss:$12 sps:$4 sm:$0xff]   ;;  %v3488_v5 = vld [vmem:[%s3996_s14 + $0x80] ss:$12 sps:$4 sm:$0xff]  }
  0xcd   : > { %1281 = vmatpush1.bf16.msra.mxu0 %v3407_v8  ;;  %3290 = vmatpush1.bf16.msra.mxu1 %v3407_v8  ;;  %v3487_v4 = vld [vmem:[%s3996_s14 + $0xf0] ss:$12 sps:$4 sm:$0xff]   ;;  %v3489_v6 = vld [vmem:[%s3996_s14 + $0x10c] ss:$12 sps:$4 sm:$0xff]   ;;  %v3492_v8 = vld [vmem:[%s3996_s14 + $0x108] ss:$12 sps:$4 sm:$0xff]  }
  0xce   : > { %1282 = vmatprep.subr.bf16.mxu0 %v3774_v2  ;;  %3275 = vmatprep.subr.bf16.mxu1 %v3774_v2  ;;  %v3491_v7 = vld [vmem:[%s3996_s14 + $0x98] ss:$12 sps:$4 sm:$0xff]   ;;  %v3493_v9 = vld [vmem:[%s3996_s14 + $0xb0] ss:$12 sps:$4 sm:$0xff]  }
  0xd1   : > { %1283 = vmatpush1.bf16.msra.mxu0 %v3408_v10  ;;  %3291 = vmatpush1.bf16.msra.mxu1 %v3408_v10  ;;  %v3494_v10 = vld [vmem:[%s3996_s14 + $0x124] ss:$12 sps:$4 sm:$0xff]  }
  0xd2   : > { %1284 = vmatprep.subr.bf16.mxu0 %v3774_v2  ;;  %3276 = vmatprep.subr.bf16.mxu1 %v3774_v2 }
  0xd5   : > { %1285 = vmatpush1.bf16.msra.mxu0 %v3409_v11  ;;  %3292 = vmatpush1.bf16.msra.mxu1 %v3409_v11  ;;  %v3496_v11 = vld [vmem:[%s3996_s14 + $0xc8] ss:$12 sps:$4 sm:$0xff]  }
  0xd6   : > { %1286 = vmatprep.subr.bf16.mxu0 %v3774_v2  ;;  %3277 = vmatprep.subr.bf16.mxu1 %v3774_v2 }
  0xd9   : > { %1287 = vmatpush1.bf16.msra.mxu0 %v3410_v12  ;;  %3293 = vmatpush1.bf16.msra.mxu1 %v3410_v12  ;;  %v3497_v12 = vld [vmem:[%s3996_s14 + $0x120] ss:$12 sps:$4 sm:$0xff]  }
  0xda   : > { %1288 = vmatprep.subr.bf16.mxu0 %v3774_v2  ;;  %3278 = vmatprep.subr.bf16.mxu1 %v3774_v2 }
  0xdd   : > { %1289 = vmatpush1.bf16.msra.mxu0 %v3411_v13  ;;  %3294 = vmatpush1.bf16.msra.mxu1 %v3411_v13  ;;  %v3498_v13 = vld [vmem:[%s3996_s14 + $0xe0] ss:$12 sps:$4 sm:$0xff]  }
  0xde   : > { %1290 = vmatprep.subr.bf16.mxu0 %v3774_v2  ;;  %3279 = vmatprep.subr.bf16.mxu1 %v3774_v2 }
  0xe1   : > { %1291 = vmatpush1.bf16.msra.mxu0 %v3412_v14  ;;  %3295 = vmatpush1.bf16.msra.mxu1 %v3412_v14  ;;  %v3499_v14 = vld [vmem:[%s3996_s14 + $0x13c] ss:$12 sps:$4 sm:$0xff]  }
  0xe2   : > { %1292 = vmatprep.subr.bf16.mxu0 %v3774_v2  ;;  %3280 = vmatprep.subr.bf16.mxu1 %v3774_v2 }
  0xe5   : > { %1293 = vmatpush1.bf16.msra.mxu0 %v3413_v15  ;;  %3296 = vmatpush1.bf16.msra.mxu1 %v3413_v15  ;;  %v3501_v15 = vld [vmem:[%s3996_s14 + $0xf8] ss:$12 sps:$4 sm:$0xff]  }
  0xe6   : > { %1294 = vmatprep.subr.bf16.mxu0 %v3774_v2  ;;  %3281 = vmatprep.subr.bf16.mxu1 %v3774_v2 }
  0xe9   : > { %1295 = vmatpush1.bf16.msra.mxu0 %v3414_v16  ;;  %3297 = vmatpush1.bf16.msra.mxu1 %v3414_v16  ;;  %v3502_v16 = vld [vmem:[%s3996_s14 + $0x138] ss:$12 sps:$4 sm:$0xff]  }
  0xea   : > { %1296 = vmatprep.subr.bf16.mxu0 %v3774_v2  ;;  %3282 = vmatprep.subr.bf16.mxu1 %v3774_v2 }
  0xed   : > { %1297 = vmatpush1.bf16.msra.mxu0 %v3415_v17  ;;  %3298 = vmatpush1.bf16.msra.mxu1 %v3415_v17  ;;  %v3503_v17 = vld [vmem:[%s3996_s14 + $0x110] ss:$12 sps:$4 sm:$0xff]  }
  0xee   : > { %1298 = vmatprep.subr.bf16.mxu0 %v3774_v2  ;;  %3283 = vmatprep.subr.bf16.mxu1 %v3774_v2 }
  0xf1   : > { %1299 = vmatpush1.bf16.msra.mxu0 %v3416_v18  ;;  %3299 = vmatpush1.bf16.msra.mxu1 %v3416_v18  ;;  %v3504_v18 = vld [vmem:[%s3996_s14 + $0x154] ss:$12 sps:$4 sm:$0xff]  }
  0xf2   : > { %1300 = vmatprep.subr.bf16.mxu0 %v3774_v2  ;;  %3284 = vmatprep.subr.bf16.mxu1 %v3774_v2  ;;  %v3484_v2 = vld [vmem:[%s3996_s14 + $0xf4] ss:$12 sps:$4 sm:$0xff]  }
  0xf5   : > { %1301 = vmatpush1.bf16.msra.mxu0 %v3417_v19  ;;  %3300 = vmatpush1.bf16.msra.mxu1 %v3417_v19  ;;  %v3506_v19 = vld [vmem:[%s3996_s14 + $0x128] ss:$12 sps:$4 sm:$0xff]  }
  0xf6   : > { %3189 = vmatprep.subr.bf16.mxu1 %v3424_v20 }
  0xf8   : > { %1303 = vmatmul.mubr.bf16.vlgmr.msra.gmra.mrb[0].mxu0 %v3418_v21  ;;  %1495 = vmatmul.mubr.bf16.vlgmr.msra.gmra.mrb[0].mxu1 %v3421_v22  ;;  %v3508_v21 = vld [vmem:[%s3996_s14 + $0x140] ss:$12 sps:$4 sm:$0xff]  }
  0xf9   : > { %3190 = vmatpush3.bf16.msra.mxu1 %v3424_v20  ;;  %1310 = vmatprep.mubr.bf16.mxu0 %v3425_v23  ;;  %v3507_v20 = vld [vmem:[%s3996_s14 + $0x150] ss:$12 sps:$4 sm:$0xff]   ;;  %v3509_v22 = vld [vmem:[%s3996_s14 + $0x16c] ss:$12 sps:$4 sm:$0xff]  }
  0xfa   : > { %1502 = vmatprep.mubr.bf16.mxu1 %v3427_v24  ;;  %3191 = vmatprep.subr.bf16.mxu1 %v3431_v25  ;;  %v3511_v23 = vld [vmem:[%s3996_s14 + $0x158] ss:$12 sps:$4 sm:$0xff]   ;;  %v3512_v24 = vld [vmem:[%s3996_s14 + $0x168] ss:$12 sps:$4 sm:$0xff]  }
  0xfd   : > { %3192 = vmatpush3.bf16.msra.mxu1 %v3431_v25  ;;  %v3513_v25 = vld [vmem:[%s3996_s14 + $0x170] ss:$12 sps:$4 sm:$0xff]  }
  0xfe   : > { %3193 = vmatprep.subr.bf16.mxu1 %v3438_v26 }
 0x100   : > { %1311 = vmatmul.mubr.bf16.gmra.mrb[4].mxu0 %v3429_v27  ;;  %1503 = vmatmul.mubr.bf16.gmra.mrb[4].mxu1 %v3430_v28  ;;  %v3516_v27 = vld [vmem:[%s3996_s14 + $0x188] ss:$12 sps:$4 sm:$0xff]   ;;  %v3517_v28 = vld [vmem:[%s3996_s14 + $0x180] ss:$12 sps:$4 sm:$0xff]  }
 0x101   : > { %1318 = vmatprep.mubr.bf16.mxu0 %v3432_v29  ;;  %1510 = vmatprep.mubr.bf16.mxu1 %v3434_v30  ;;  %v3518_v29 = vld [vmem:[%s3996_s14 + $0x1a0] ss:$12 sps:$4 sm:$0xff]   ;;  %v3519_v30 = vld [vmem:[%s3996_s14 + $0x19c] ss:$12 sps:$4 sm:$0xff]  }
 0x102   : > { %3194 = vmatpush3.bf16.msra.mxu1 %v3438_v26  ;;  %v3514_v26 = vld [vmem:[%s3996_s14 + $0x184] ss:$12 sps:$4 sm:$0xff]  }
 0x103   : > { %3195 = vmatprep.subr.bf16.mxu1 %v3445_v31 }
 0x106   : > { %3196 = vmatpush3.bf16.msra.mxu1 %v3445_v31  ;;  %v3521_v31 = vld [vmem:[%s3996_s14 + $0x1b8] ss:$12 sps:$4 sm:$0xff]  }
 0x107   : > { %3197 = vmatprep.subr.bf16.mxu1 %v3452_v33 }
 0x108   : > { %1319 = vmatmul.mubr.bf16.gmra.mrb[8].mxu0 %v3436_v32  ;;  %1511 = vmatmul.mubr.bf16.gmra.mrb[8].mxu1 %v3437_v34  ;;  %v3522_v32 = vld [vmem:[%s3996_s14 + $0x198] ss:$12 sps:$4 sm:$0xff]   ;;  %v3524_v34 = vld [vmem:[%s3996_s14 + $0x1b4] ss:$12 sps:$4 sm:$0xff]  }
 0x109   : > { %1326 = vmatprep.mubr.bf16.mxu0 %v3439_v35  ;;  %1518 = vmatprep.mubr.bf16.mxu1 %v3441_v36  ;;  %v3526_v35 = vld [vmem:[%s3996_s14 + $0x1e8] ss:$12 sps:$4 sm:$0xff]   ;;  %v3527_v36 = vld [vmem:[%s3996_s14 + $0x1b0] ss:$12 sps:$4 sm:$0xff]  }
 0x10a   : > { %3198 = vmatpush3.bf16.msra.mxu1 %v3452_v33  ;;  %v3523_v33 = vld [vmem:[%s3996_s14 + $0x1d0] ss:$12 sps:$4 sm:$0xff]  }
 0x10b   : > { %3199 = vmatprep.subr.bf16.mxu1 %v3459_v37 }
 0x10e   : > { %3200 = vmatpush3.bf16.msra.mxu1 %v3459_v37  ;;  %v3528_v37 = vld [vmem:[%s3996_s14 + $0x200] ss:$12 sps:$4 sm:$0xff]  }
 0x10f   : > { %3201 = vmatprep.subr.bf16.mxu1 %v3466_v42 }
 0x110   : > { %1327 = vmatmul.mubr.bf16.gmra.mrb[12].mxu0 %v3443_v38  ;;  %1519 = vmatmul.mubr.bf16.gmra.mrb[12].mxu1 %v3444_v39  ;;  %v3529_v38 = vld [vmem:[%s3996_s14 + $0x1cc] ss:$12 sps:$4 sm:$0xff]  }
 0x111   : > { %1334 = vmatprep.mubr.bf16.mxu0 %v3446_v40  ;;  %1526 = vmatprep.mubr.bf16.mxu1 %v3448_v41  ;;  %v3531_v39 = vld [vmem:[%s3996_s14 + $0x218] ss:$12 sps:$4 sm:$0xff]   ;;  %v3532_v40 = vld [vmem:[%s3996_s14 + $0x1c8] ss:$12 sps:$4 sm:$0xff]   ;;  %v3533_v41 = vld [vmem:[%s3996_s14 + $0x230] ss:$12 sps:$4 sm:$0xff]  }
 0x112   : > { %3202 = vmatpush3.bf16.msra.mxu1 %v3466_v42  ;;  %v3534_v42 = vld [vmem:[%s3996_s14 + $0x1e4] ss:$12 sps:$4 sm:$0xff]  }
 0x113   : > { %3203 = vmatprep.subr.bf16.mxu1 %v3473_v43 }
 0x116   : > { %3204 = vmatpush3.bf16.msra.mxu1 %v3473_v43  ;;  %v3536_v43 = vld [vmem:[%s3996_s14 + $0x248] ss:$12 sps:$4 sm:$0xff]  }
 0x118   : > { %1335 = vmatmul.mubr.bf16.gmra.mrb[16].mxu0 %v3450_v44  ;;  %1527 = vmatmul.mubr.bf16.gmra.mrb[16].mxu1 %v3451_v45  ;;  %v3537_v44 = vld [vmem:[%s3996_s14 + $0x1e0] ss:$12 sps:$4 sm:$0xff]  }
 0x119   : > { %1342 = vmatprep.mubr.bf16.mxu0 %v3453_v46  ;;  %1534 = vmatprep.mubr.bf16.mxu1 %v3455_v47  ;;  %v3538_v45 = vld [vmem:[%s3996_s14 + $0x260] ss:$12 sps:$4 sm:$0xff]   ;;  %v3539_v46 = vld [vmem:[%s3996_s14 + $0x1fc] ss:$12 sps:$4 sm:$0xff]   ;;  %v3541_v47 = vld [vmem:[%s3996_s14 + $0x278] ss:$12 sps:$4 sm:$0xff]  }
 0x120   : > { %1343 = vmatmul.mubr.bf16.gmra.mrb[20].mxu0 %v3457_v48  ;;  %1535 = vmatmul.mubr.bf16.gmra.mrb[20].mxu1 %v3458_v49  ;;  %v3542_v48 = vld [vmem:[%s3996_s14 + $0x1f8] ss:$12 sps:$4 sm:$0xff]   ;;  %v3543_v49 = vld [vmem:[%s3996_s14 + $0x290] ss:$12 sps:$4 sm:$0xff]  }
 0x121   : > { %1350 = vmatprep.mubr.bf16.mxu0 %v3460_v50  ;;  %1542 = vmatprep.mubr.bf16.mxu1 %v3462_v51  ;;  %v3544_v50 = vld [vmem:[%s3996_s14 + $0x214] ss:$12 sps:$4 sm:$0xff]  }
 0x122   : > { %v3546_v51 = vld [vmem:[%s3996_s14 + $0x2a8] ss:$12 sps:$4 sm:$0xff]  }
 0x128   : > { %1351 = vmatmul.mubr.bf16.gmra.mrb[24].mxu0 %v3464_v52  ;;  %1543 = vmatmul.mubr.bf16.gmra.mrb[24].mxu1 %v3465_v53  ;;  %v3547_v52 = vld [vmem:[%s3996_s14 + $0x210] ss:$12 sps:$4 sm:$0xff]   ;;  %v3548_v53 = vld [vmem:[%s3996_s14 + $0x2c0] ss:$12 sps:$4 sm:$0xff]  }
 0x129   : > { %1358 = vmatprep.mubr.bf16.mxu0 %v3467_v54  ;;  %1550 = vmatprep.mubr.bf16.mxu1 %v3469_v55  ;;  %v3549_v54 = vld [vmem:[%s3996_s14 + $0x22c] ss:$12 sps:$4 sm:$0xff]  }
 0x12a   : > { %v3551_v55 = vld [vmem:[%s3996_s14 + $0x2d8] ss:$12 sps:$4 sm:$0xff]  }
 0x130   : > { %1359 = vmatmul.mubr.bf16.gmra.mrb[28].mxu0 %v3471_v56  ;;  %1551 = vmatmul.mubr.bf16.gmra.mrb[28].mxu1 %v3472_v57  ;;  %v3552_v56 = vld [vmem:[%s3996_s14 + $0x228] ss:$12 sps:$4 sm:$0xff]   ;;  %v3553_v57 = vld [vmem:[%s3996_s14 + $0x2f0] ss:$12 sps:$4 sm:$0xff]  }
 0x131   : > { %1366 = vmatprep.mubr.bf16.mxu0 %v3474_v58  ;;  %3205 = vmatprep.mubr.bf16.mxu1 %v3476_v59 }
 0x138   : > { %1367 = vmatmul.mubr.bf16.gmra.mrb[32].mxu0 %v3477_v60  ;;  %3206 = vmatmul.mubr.bf16.vlgmr.msra.gmra.mrb[32].mxu1 %v3478_v61 }
 0x139   : > { %1374 = vmatprep.mubr.bf16.mxu0 %v3479_v62  ;;  %3209 = vmatprep.mubr.bf16.mxu1 %v3481_v63 }
 0x140   : > { %1375 = vmatmul.mubr.bf16.gmra.mrb[36].mxu0 %v3482_v0  ;;  %3210 = vmatmul.mubr.bf16.gmra.mrb[36].mxu1 %v3483_v1 }
 0x141   : > { %1382 = vmatprep.mubr.bf16.mxu0 %v3484_v2  ;;  %3213 = vmatprep.mubr.bf16.mxu1 %v3486_v3 }
 0x148   : > { %1383 = vmatmul.mubr.bf16.gmra.mrb[40].mxu0 %v3487_v4  ;;  %3214 = vmatmul.mubr.bf16.gmra.mrb[40].mxu1 %v3488_v5 }
 0x149   : > { %1390 = vmatprep.mubr.bf16.mxu0 %v3489_v6  ;;  %3217 = vmatprep.mubr.bf16.mxu1 %v3491_v7 }
 0x150   : > { %1391 = vmatmul.mubr.bf16.gmra.mrb[44].mxu0 %v3492_v8  ;;  %3218 = vmatmul.mubr.bf16.gmra.mrb[44].mxu1 %v3493_v9 }
 0x151   : > { %1398 = vmatprep.mubr.bf16.mxu0 %v3494_v10  ;;  %3221 = vmatprep.mubr.bf16.mxu1 %v3496_v11 }
 0x158   : > { %1399 = vmatmul.mubr.bf16.gmra.mrb[48].mxu0 %v3497_v12  ;;  %3222 = vmatmul.mubr.bf16.gmra.mrb[48].mxu1 %v3498_v13 }
 0x159   : > { %1406 = vmatprep.mubr.bf16.mxu0 %v3499_v14  ;;  %3225 = vmatprep.mubr.bf16.mxu1 %v3501_v15 }
 0x160   : > { %1407 = vmatmul.mubr.bf16.gmra.mrb[52].mxu0 %v3502_v16  ;;  %3226 = vmatmul.mubr.bf16.gmra.mrb[52].mxu1 %v3503_v17 }
 0x161   : > { %1414 = vmatprep.mubr.bf16.mxu0 %v3504_v18  ;;  %3229 = vmatprep.mubr.bf16.mxu1 %v3506_v19 }
 0x168   : > { %1415 = vmatmul.mubr.bf16.gmra.mrb[56].mxu0 %v3507_v20  ;;  %3230 = vmatmul.mubr.bf16.gmra.mrb[56].mxu1 %v3508_v21 }
 0x169   : > { %1422 = vmatprep.mubr.bf16.mxu0 %v3509_v22  ;;  %3233 = vmatprep.mubr.bf16.mxu1 %v3511_v23 }
 0x170   : > { %1423 = vmatmul.mubr.bf16.gmra.mrb[60].mxu0 %v3512_v24  ;;  %3234 = vmatmul.mubr.bf16.gmra.mrb[60].mxu1 %v3513_v25 }
 0x171   : > { %1430 = vmatprep.mubr.bf16.mxu0 %v3514_v26  ;;  %3237 = vmatprep.mubr.bf16.mxu1 %v3516_v27 }
 0x178   : > { %1431 = vmatmul.mubr.bf16.gmra.mrb[64].mxu0 %v3517_v28  ;;  %3238 = vmatmul.mubr.bf16.gmra.mrb[64].mxu1 %v3518_v29 }
 0x179   : > { %1438 = vmatprep.mubr.bf16.mxu0 %v3519_v30  ;;  %3241 = vmatprep.mubr.bf16.mxu1 %v3521_v31 }
 0x180   : > { %1439 = vmatmul.mubr.bf16.gmra.mrb[68].mxu0 %v3522_v32  ;;  %3242 = vmatmul.mubr.bf16.gmra.mrb[68].mxu1 %v3523_v33 }
 0x181   : > { %1446 = vmatprep.mubr.bf16.mxu0 %v3524_v34  ;;  %3245 = vmatprep.mubr.bf16.mxu1 %v3526_v35 }
 0x188   : > { %1447 = vmatmul.mubr.bf16.gmra.mrb[72].mxu0 %v3527_v36  ;;  %3246 = vmatmul.mubr.bf16.gmra.mrb[72].mxu1 %v3528_v37 }
 0x189   : > { %1454 = vmatprep.mubr.bf16.mxu0 %v3529_v38  ;;  %3249 = vmatprep.mubr.bf16.mxu1 %v3531_v39 }
 0x190   : > { %1455 = vmatmul.mubr.bf16.gmra.mrb[76].mxu0 %v3532_v40  ;;  %3250 = vmatmul.mubr.bf16.gmra.mrb[76].mxu1 %v3533_v41 }
 0x191   : > { %1462 = vmatprep.mubr.bf16.mxu0 %v3534_v42  ;;  %3253 = vmatprep.mubr.bf16.mxu1 %v3536_v43 }
 0x198   : > { %1463 = vmatmul.mubr.bf16.gmra.mrb[80].mxu0 %v3537_v44  ;;  %3254 = vmatmul.mubr.bf16.gmra.mrb[80].mxu1 %v3538_v45 }
 0x199   : > { %1470 = vmatprep.mubr.bf16.mxu0 %v3539_v46  ;;  %3257 = vmatprep.mubr.bf16.mxu1 %v3541_v47 }
 0x1a0   : > { %1471 = vmatmul.mubr.bf16.gmra.mrb[84].mxu0 %v3542_v48  ;;  %3258 = vmatmul.mubr.bf16.gmra.mrb[84].mxu1 %v3543_v49 }
 0x1a1   : > { %1478 = vmatprep.mubr.bf16.mxu0 %v3544_v50  ;;  %3261 = vmatprep.mubr.bf16.mxu1 %v3546_v51 }
 0x1a8   : > { %1479 = vmatmul.mubr.bf16.gmra.mrb[88].mxu0 %v3547_v52  ;;  %3262 = vmatmul.mubr.bf16.gmra.mrb[88].mxu1 %v3548_v53 }
 0x1a9   : > { %1486 = vmatprep.mubr.bf16.mxu0 %v3549_v54  ;;  %3265 = vmatprep.mubr.bf16.mxu1 %v3551_v55 }
 0x1b0   : > { %1487 = vmatmul.mubr.bf16.gmra.mrb[92].mxu0 %v3552_v56  ;;  %3266 = vmatmul.mubr.bf16.gmra.mrb[92].mxu1 %v3553_v57 }
 0x1cb   : > { %v4234_v58 = vpop.f32.mrb[0].mxu0  ;;  %v4236_v59 = vpop.f32.mrb[0].mxu1 }
 0x1cc   : > { %v1306_v60 = vpop.f32.mrb[1].mxu0  ;;  %v1498_v61 = vpop.f32.mrb[1].mxu1 }
 0x1cd   : > { %v4238_v62 = vpop.f32.mrb[2].mxu0  ;;  %v4240_v63 = vpop.f32.mrb[2].mxu1  ;;  %v376_v61 = vld [vmem:[#allocation2 + $0x10] sm:$0xff] }
 0x1ce   : > { %v1309_v0 = vpop.f32.mrb[3].mxu0  ;;  %v1501_v1 = vpop.f32.mrb[3].mxu1 }
 0x1d3   : > { %v1312_v2 = vpop.f32.mrb[4].mxu0  ;;  %v4242_v3 = vpop.f32.mrb[4].mxu1 }
 0x1d4   : > { %v1314_v4 = vpop.f32.mrb[5].mxu0  ;;  %v1506_v5 = vpop.f32.mrb[5].mxu1 }
 0x1d5   : > { %v4244_v6 = vpop.f32.mrb[6].mxu0  ;;  %v4246_v7 = vpop.f32.mrb[6].mxu1  ;;  %v374_v5 = vld [vmem:[#allocation2] sm:$0xff] }
 0x1d6   : > { %v1317_v8 = vpop.f32.mrb[7].mxu0  ;;  %v1509_v9 = vpop.f32.mrb[7].mxu1 }
 0x1db   : > { %v4248_v10 = vpop.f32.mrb[8].mxu0  ;;  %v4250_v11 = vpop.f32.mrb[8].mxu1 }
 0x1dc   : > { %v1322_v12 = vpop.f32.mrb[9].mxu0  ;;  %v1514_v13 = vpop.f32.mrb[9].mxu1 }
 0x1dd   : > { %v4252_v14 = vpop.f32.mrb[10].mxu0  ;;  %v4254_v15 = vpop.f32.mrb[10].mxu1  ;;  %v377_v13 = vld [vmem:[#allocation2 + $0x18] sm:$0xff] }
 0x1de   : > { %v1325_v16 = vpop.f32.mrb[11].mxu0  ;;  %v1517_v17 = vpop.f32.mrb[11].mxu1 }
 0x1e3   : > { %v4256_v18 = vpop.f32.mrb[12].mxu0  ;;  %v4258_v19 = vpop.f32.mrb[12].mxu1 }
 0x1e4   : > { %v1330_v20 = vpop.f32.mrb[13].mxu0  ;;  %v1522_v21 = vpop.f32.mrb[13].mxu1 }
 0x1e5   : > { %v4260_v22 = vpop.f32.mrb[14].mxu0  ;;  %v4262_v23 = vpop.f32.mrb[14].mxu1 }
 0x1e6   : > { %v1333_v24 = vpop.f32.mrb[15].mxu0  ;;  %v1525_v25 = vpop.f32.mrb[15].mxu1 }
 0x1e7   : > { %v375_v24 = vld [vmem:[#allocation2 + $0x8] sm:$0xff] }
 0x1eb   : > { %v4264_v26 = vpop.f32.mrb[16].mxu0  ;;  %v4266_v27 = vpop.f32.mrb[16].mxu1 }
 0x1ec   : > { %v1338_v28 = vpop.f32.mrb[17].mxu0  ;;  %v1530_v29 = vpop.f32.mrb[17].mxu1 }
 0x1ed   : > { %v4268_v30 = vpop.f32.mrb[18].mxu0  ;;  %v4270_v31 = vpop.f32.mrb[18].mxu1 }
 0x1ee   : > { %v1341_v32 = vpop.f32.mrb[19].mxu0  ;;  %v1533_v33 = vpop.f32.mrb[19].mxu1 }
 0x1ef   : > { %v380_v33 = vld [vmem:[#allocation2 + $0x30] sm:$0xff] }
 0x1f3   : > { %v4272_v34 = vpop.f32.mrb[20].mxu0  ;;  %v4274_v35 = vpop.f32.mrb[20].mxu1 }
 0x1f4   : > { %v1346_v36 = vpop.f32.mrb[21].mxu0  ;;  %v1538_v37 = vpop.f32.mrb[21].mxu1 }
 0x1f5   : > { %v4276_v38 = vpop.f32.mrb[22].mxu0  ;;  %v4278_v39 = vpop.f32.mrb[22].mxu1 }
 0x1f6   : > { %v1349_v40 = vpop.f32.mrb[23].mxu0  ;;  %v1541_v41 = vpop.f32.mrb[23].mxu1 }
 0x1fb   : > { %v4280_v42 = vpop.f32.mrb[24].mxu0  ;;  %v4282_v43 = vpop.f32.mrb[24].mxu1 }
 0x1fc   : > { %v1354_v44 = vpop.f32.mrb[25].mxu0  ;;  %v1546_v45 = vpop.f32.mrb[25].mxu1 }
 0x1fd   : > { %v4284_v46 = vpop.f32.mrb[26].mxu0  ;;  %v4286_v47 = vpop.f32.mrb[26].mxu1 }
 0x1fe   : > { %v1357_v48 = vpop.f32.mrb[27].mxu0  ;;  %v1549_v49 = vpop.f32.mrb[27].mxu1 }
 0x203   : > { %v4288_v50 = vpop.f32.mrb[28].mxu0  ;;  %v4290_v51 = vpop.f32.mrb[28].mxu1 }
 0x204   : > { %v1362_v52 = vpop.f32.mrb[29].mxu0  ;;  %v1554_v53 = vpop.f32.mrb[29].mxu1 }
 0x205   : > { %v4292_v54 = vpop.f32.mrb[30].mxu0  ;;  %v4294_v55 = vpop.f32.mrb[30].mxu1 }
 0x206   : > { %v1365_v56 = vpop.f32.mrb[31].mxu0  ;;  %v1557_v57 = vpop.f32.mrb[31].mxu1 }
 0x207   : > { %v379_v56 = vld [vmem:[#allocation2 + $0x28] sm:$0xff] }
 0x20b   : > { %v4296_v60 = vpop.f32.mrb[32].mxu0  ;;  %v3207_v0 = vpop.f32.mrb[32].mxu1 }
 0x20c   : > { %v1602_v1 = vadd.f32 %v3207_v0, %v1312_v2  ;;  %v1370_v4 = vpop.f32.mrb[33].mxu0  ;;  %v1593_v8 = vpop.f32.mrb[33].mxu1 }
 0x20d   : > { %v1594_v9 = vadd.f32 %v1593_v8, %v4234_v58  ;;  %v4299_v12 = vpop.f32.mrb[34].mxu0  ;;  %v3208_v16 = vpop.f32.mrb[34].mxu1  ;;  %v384_v4 = vld [vmem:[#allocation2 + $0x50] sm:$0xff] }
 0x20e   : > { %v1850_v17 = vadd.f32 %v1602_v1, %v376_v61  ;;  %v1605_v20 = vadd.f32 %v3208_v16, %v4244_v6  ;;  %v1373_v21 = vpop.f32.mrb[35].mxu0  ;;  %v1596_v25 = vpop.f32.mrb[35].mxu1  ;;  %v378_v6 = vld [vmem:[#allocation2 + $0x20] sm:$0xff] }
 0x20f   : > { %v1848_v28 = vadd.f32 %v1594_v9, %v374_v5  ;;  %v1597_v29 = vadd.f32 %v1596_v25, %v4238_v62  ;;  %v381_v62 = vld [vmem:[#allocation2 + $0x38] sm:$0xff] }
 0x210   : > { %1914 = vst [vmem:[#allocation2 + $0x10] sm:$0xff] %v1850_v17  ;;  %v1851_v2 = vadd.f32 %v1605_v20, %v377_v13 }
 0x211   : > { %1912 = vst [vmem:[#allocation2] sm:$0xff] %v1848_v28  ;;  %v1849_v32 = vadd.f32 %v1597_v29, %v375_v24  ;;  %v383_v28 = vld [vmem:[#allocation2 + $0x48] sm:$0xff] }
 0x212   : > { %1915 = vst [vmem:[#allocation2 + $0x18] sm:$0xff] %v1851_v2 }
 0x213   : > { %1913 = vst [vmem:[#allocation2 + $0x8] sm:$0xff] %v1849_v32  ;;  %v4303_v58 = vpop.f32.mrb[36].mxu0  ;;  %v3211_v36 = vpop.f32.mrb[36].mxu1 }
 0x214   : > { %v1618_v37 = vadd.f32 %v3211_v36, %v4256_v18  ;;  %v1378_v40 = vpop.f32.mrb[37].mxu0  ;;  %v1609_v41 = vpop.f32.mrb[37].mxu1  ;;  %v388_v36 = vld [vmem:[#allocation2 + $0x70] sm:$0xff] }
 0x215   : > { %v1610_v44 = vadd.f32 %v1609_v41, %v4248_v10  ;;  %v4307_v45 = vpop.f32.mrb[38].mxu0  ;;  %v3212_v48 = vpop.f32.mrb[38].mxu1  ;;  %v386_v41 = vld [vmem:[#allocation2 + $0x60] sm:$0xff] }
 0x216   : > { %v1854_v49 = vadd.f32 %v1618_v37, %v380_v33  ;;  %v1621_v52 = vadd.f32 %v3212_v48, %v4260_v22  ;;  %v1381_v53 = vpop.f32.mrb[39].mxu0  ;;  %v1612_v57 = vpop.f32.mrb[39].mxu1  ;;  %v382_v22 = vld [vmem:[#allocation2 + $0x40] sm:$0xff]  ;;  %v389_v48 = vld [vmem:[#allocation2 + $0x78] sm:$0xff] }
 0x217   : > { %v1852_v61 = vadd.f32 %v1610_v44, %v378_v6  ;;  %v1613_v0 = vadd.f32 %v1612_v57, %v4252_v14  ;;  %v385_v14 = vld [vmem:[#allocation2 + $0x58] sm:$0xff] }
 0x218   : > { %1918 = vst [vmem:[#allocation2 + $0x30] sm:$0xff] %v1854_v49  ;;  %v1855_v18 = vadd.f32 %v1621_v52, %v381_v62 }
 0x219   : > { %1916 = vst [vmem:[#allocation2 + $0x20] sm:$0xff] %v1852_v61  ;;  %v1853_v1 = vadd.f32 %v1613_v0, %v379_v56  ;;  %v387_v56 = vld [vmem:[#allocation2 + $0x68] sm:$0xff] }
 0x21a   : > { %1919 = vst [vmem:[#allocation2 + $0x38] sm:$0xff] %v1855_v18 }
 0x21b   : > { %1917 = vst [vmem:[#allocation2 + $0x28] sm:$0xff] %v1853_v1  ;;  %v4311_v10 = vpop.f32.mrb[40].mxu0  ;;  %v3215_v5 = vpop.f32.mrb[40].mxu1 }
 0x21c   : > { %v1634_v8 = vadd.f32 %v3215_v5, %v4272_v34  ;;  %v1386_v9 = vpop.f32.mrb[41].mxu0  ;;  %v1625_v13 = vpop.f32.mrb[41].mxu1 }
 0x21d   : > { %v1626_v16 = vadd.f32 %v1625_v13, %v4264_v26  ;;  %v4315_v17 = vpop.f32.mrb[42].mxu0  ;;  %v3216_v20 = vpop.f32.mrb[42].mxu1  ;;  %v390_v9 = vld [vmem:[#allocation2 + $0x80] sm:$0xff] }
 0x21e   : > { %v1858_v21 = vadd.f32 %v1634_v8, %v384_v4  ;;  %v1637_v24 = vadd.f32 %v3216_v20, %v4276_v38  ;;  %v1389_v25 = vpop.f32.mrb[43].mxu0  ;;  %v1628_v29 = vpop.f32.mrb[43].mxu1 }
 0x21f   : > { %v1856_v2 = vadd.f32 %v1626_v16, %v382_v22  ;;  %v1629_v32 = vadd.f32 %v1628_v29, %v4268_v30  ;;  %v393_v16 = vld [vmem:[#allocation2 + $0x98] sm:$0xff] }
 0x220   : > { %1922 = vst [vmem:[#allocation2 + $0x50] sm:$0xff] %v1858_v21  ;;  %v1859_v34 = vadd.f32 %v1637_v24, %v385_v14  ;;  %v391_v24 = vld [vmem:[#allocation2 + $0x88] sm:$0xff] }
 0x221   : > { %1920 = vst [vmem:[#allocation2 + $0x40] sm:$0xff] %v1856_v2  ;;  %v1857_v33 = vadd.f32 %v1629_v32, %v383_v28 }
 0x222   : > { %1923 = vst [vmem:[#allocation2 + $0x58] sm:$0xff] %v1859_v34 }
 0x223   : > { %1921 = vst [vmem:[#allocation2 + $0x48] sm:$0xff] %v1857_v33  ;;  %v1392_v26 = vpop.f32.mrb[44].mxu0  ;;  %v3219_v37 = vpop.f32.mrb[44].mxu1 }
 0x224   : > { %v1650_v40 = vadd.f32 %v3219_v37, %v4288_v50  ;;  %v1394_v6 = vpop.f32.mrb[45].mxu0  ;;  %v1641_v38 = vpop.f32.mrb[45].mxu1  ;;  %v394_v37 = vld [vmem:[#allocation2 + $0xa0] sm:$0xff] }
 0x225   : > { %v1642_v44 = vadd.f32 %v1641_v38, %v4280_v42  ;;  %v1395_v62 = vpop.f32.mrb[46].mxu0  ;;  %v3220_v49 = vpop.f32.mrb[46].mxu1  ;;  %v392_v42 = vld [vmem:[#allocation2 + $0x90] sm:$0xff] }
 0x226   : > { %v1862_v30 = vadd.f32 %v1650_v40, %v388_v36  ;;  %v1653_v52 = vadd.f32 %v3220_v49, %v4292_v54  ;;  %v1397_v53 = vpop.f32.mrb[47].mxu0  ;;  %v1644_v57 = vpop.f32.mrb[47].mxu1  ;;  %v395_v49 = vld [vmem:[#allocation2 + $0xa8] sm:$0xff] }
 0x227   : > { %v1860_v61 = vadd.f32 %v1642_v44, %v386_v41  ;;  %v1645_v0 = vadd.f32 %v1644_v57, %v4284_v46  ;;  %v397_v41 = vld [vmem:[#allocation2 + $0xb8] sm:$0xff] }
 0x228   : > { %1926 = vst [vmem:[#allocation2 + $0x70] sm:$0xff] %v1862_v30  ;;  %v1863_v18 = vadd.f32 %v1653_v52, %v389_v48 }
 0x229   : > { %1924 = vst [vmem:[#allocation2 + $0x60] sm:$0xff] %v1860_v61  ;;  %v1861_v50 = vadd.f32 %v1645_v0, %v387_v56  ;;  %v400_v61 = vld [vmem:[#allocation2 + $0xd0] sm:$0xff] }
 0x22a   : > { %1927 = vst [vmem:[#allocation2 + $0x78] sm:$0xff] %v1863_v18 }
 0x22b   : > { %1925 = vst [vmem:[#allocation2 + $0x68] sm:$0xff] %v1861_v50  ;;  %v1400_v1 = vpop.f32.mrb[48].mxu0  ;;  %v3223_v4 = vpop.f32.mrb[48].mxu1  ;;  %v398_v50 = vld [vmem:[#allocation2 + $0xc0] sm:$0xff] }
 0x22c   : > { %v1666_v5 = vadd.f32 %v3223_v4, %v4303_v58  ;;  %v1402_v8 = vpop.f32.mrb[49].mxu0  ;;  %v1657_v54 = vpop.f32.mrb[49].mxu1 }
 0x22d   : > { %v1658_v22 = vadd.f32 %v1657_v54, %v4296_v60  ;;  %v1403_v13 = vpop.f32.mrb[50].mxu0  ;;  %v3224_v14 = vpop.f32.mrb[50].mxu1  ;;  %v396_v60 = vld [vmem:[#allocation2 + $0xb0] sm:$0xff] }
 0x22e   : > { %v1866_v46 = vadd.f32 %v1666_v5, %v392_v42  ;;  %v1669_v20 = vadd.f32 %v3224_v14, %v4307_v45  ;;  %v1405_v21 = vpop.f32.mrb[51].mxu0  ;;  %v1660_v25 = vpop.f32.mrb[51].mxu1  ;;  %v401_v5 = vld [vmem:[#allocation2 + $0xd8] sm:$0xff] }
 0x22f   : > { %v1864_v28 = vadd.f32 %v1658_v22, %v390_v9  ;;  %v1661_v29 = vadd.f32 %v1660_v25, %v4299_v12  ;;  %v399_v22 = vld [vmem:[#allocation2 + $0xc8] sm:$0xff]  ;;  %v404_v25 = vld [vmem:[#allocation2 + $0xf0] sm:$0xff] }
 0x230   : > { %1930 = vst [vmem:[#allocation2 + $0x90] sm:$0xff] %v1866_v46  ;;  %v1867_v2 = vadd.f32 %v1669_v20, %v393_v16 }
 0x231   : > { %1928 = vst [vmem:[#allocation2 + $0x80] sm:$0xff] %v1864_v28  ;;  %v1865_v58 = vadd.f32 %v1661_v29, %v391_v24 }
 0x232   : > { %1931 = vst [vmem:[#allocation2 + $0x98] sm:$0xff] %v1867_v2  ;;  %v402_v2 = vld [vmem:[#allocation2 + $0xe0] sm:$0xff] }
 0x233   : > { %1929 = vst [vmem:[#allocation2 + $0x88] sm:$0xff] %v1865_v58  ;;  %v1408_v32 = vpop.f32.mrb[52].mxu0  ;;  %v3227_v34 = vpop.f32.mrb[52].mxu1 }
 0x234   : > { %v1682_v33 = vadd.f32 %v3227_v34, %v1392_v26  ;;  %v1410_v36 = vpop.f32.mrb[53].mxu0  ;;  %v1673_v40 = vpop.f32.mrb[53].mxu1  ;;  %v405_v34 = vld [vmem:[#allocation2 + $0xf8] sm:$0xff] }
 0x235   : > { %v1674_v45 = vadd.f32 %v1673_v40, %v4311_v10  ;;  %v1411_v6 = vpop.f32.mrb[54].mxu0  ;;  %v3228_v38 = vpop.f32.mrb[54].mxu1  ;;  %v403_v40 = vld [vmem:[#allocation2 + $0xe8] sm:$0xff] }
 0x236   : > { %v1870_v44 = vadd.f32 %v1682_v33, %v396_v60  ;;  %v1685_v12 = vadd.f32 %v3228_v38, %v1395_v62  ;;  %v1413_v48 = vpop.f32.mrb[55].mxu0  ;;  %v1676_v30 = vpop.f32.mrb[55].mxu1 }
 0x237   : > { %v1868_v52 = vadd.f32 %v1674_v45, %v394_v37  ;;  %v1677_v53 = vadd.f32 %v1676_v30, %v4315_v17  ;;  %v406_v30 = vld [vmem:[#allocation2 + $0x100] sm:$0xff] }
 0x238   : > { %1934 = vst [vmem:[#allocation2 + $0xb0] sm:$0xff] %v1870_v44  ;;  %v1871_v56 = vadd.f32 %v1685_v12, %v397_v41 }
 0x239   : > { %1932 = vst [vmem:[#allocation2 + $0xa0] sm:$0xff] %v1868_v52  ;;  %v1869_v26 = vadd.f32 %v1677_v53, %v395_v49 }
 0x23a   : > { %1935 = vst [vmem:[#allocation2 + $0xb8] sm:$0xff] %v1871_v56 }
 0x23b   : > { %1933 = vst [vmem:[#allocation2 + $0xa8] sm:$0xff] %v1869_v26  ;;  %v1416_v57 = vpop.f32.mrb[56].mxu0  ;;  %v3231_v10 = vpop.f32.mrb[56].mxu1 }
 0x23c   : > { %v1698_v0 = vadd.f32 %v3231_v10, %v1408_v32  ;;  %v1418_v18 = vpop.f32.mrb[57].mxu0  ;;  %v1689_v42 = vpop.f32.mrb[57].mxu1 }
 0x23d   : > { %v1690_v62 = vadd.f32 %v1689_v42, %v1400_v1  ;;  %v1419_v4 = vpop.f32.mrb[58].mxu0  ;;  %v3232_v8 = vpop.f32.mrb[58].mxu1  ;;  %v408_v42 = vld [vmem:[#allocation2 + $0x110] sm:$0xff] }
 0x23e   : > { %v1874_v9 = vadd.f32 %v1698_v0, %v400_v61  ;;  %v1701_v54 = vadd.f32 %v3232_v8, %v1411_v6  ;;  %v1421_v17 = vpop.f32.mrb[59].mxu0  ;;  %v1692_v16 = vpop.f32.mrb[59].mxu1  ;;  %v407_v61 = vld [vmem:[#allocation2 + $0x108] sm:$0xff] }
 0x23f   : > { %v1872_v14 = vadd.f32 %v1690_v62, %v398_v50  ;;  %v1693_v46 = vadd.f32 %v1692_v16, %v1403_v13 }
 0x240   : > { %1938 = vst [vmem:[#allocation2 + $0xd0] sm:$0xff] %v1874_v9  ;;  %v1875_v20 = vadd.f32 %v1701_v54, %v401_v5  ;;  %v409_v54 = vld [vmem:[#allocation2 + $0x118] sm:$0xff] }
 0x241   : > { %1936 = vst [vmem:[#allocation2 + $0xc0] sm:$0xff] %v1872_v14  ;;  %v1873_v21 = vadd.f32 %v1693_v46, %v399_v22 }
 0x242   : > { %1939 = vst [vmem:[#allocation2 + $0xd8] sm:$0xff] %v1875_v20 }
 0x243   : > { %1937 = vst [vmem:[#allocation2 + $0xc8] sm:$0xff] %v1873_v21  ;;  %v1424_v24 = vpop.f32.mrb[60].mxu0  ;;  %v3235_v28 = vpop.f32.mrb[60].mxu1 }
 0x244   : > { %v1714_v1 = vadd.f32 %v3235_v28, %v1424_v24  ;;  %v1426_v29 = vpop.f32.mrb[61].mxu0  ;;  %v1705_v58 = vpop.f32.mrb[61].mxu1  ;;  %v410_v24 = vld [vmem:[#allocation2 + $0x120] sm:$0xff] }
 0x245   : > { %v1706_v32 = vadd.f32 %v1705_v58, %v1416_v57  ;;  %v1427_v60 = vpop.f32.mrb[62].mxu0  ;;  %v3236_v33 = vpop.f32.mrb[62].mxu1  ;;  %v411_v58 = vld [vmem:[#allocation2 + $0x128] sm:$0xff] }
 0x246   : > { %v1878_v36 = vadd.f32 %v1714_v1, %v404_v25  ;;  %v1717_v37 = vadd.f32 %v3236_v33, %v1427_v60  ;;  %v1429_v13 = vpop.f32.mrb[63].mxu0  ;;  %v1708_v45 = vpop.f32.mrb[63].mxu1 }
 0x247   : > { %v1876_v6 = vadd.f32 %v1706_v32, %v402_v2  ;;  %v1709_v41 = vadd.f32 %v1708_v45, %v1419_v4 }
 0x248   : > { %1942 = vst [vmem:[#allocation2 + $0xf0] sm:$0xff] %v1878_v36  ;;  %v1879_v38 = vadd.f32 %v1717_v37, %v405_v34 }
 0x249   : > { %1940 = vst [vmem:[#allocation2 + $0xe0] sm:$0xff] %v1876_v6  ;;  %v1877_v44 = vadd.f32 %v1709_v41, %v403_v40  ;;  %v412_v40 = vld [vmem:[#allocation2 + $0x130] sm:$0xff] }
 0x24a   : > { %1943 = vst [vmem:[#allocation2 + $0xf8] sm:$0xff] %v1879_v38 }
 0x24b   : > { %1941 = vst [vmem:[#allocation2 + $0xe8] sm:$0xff] %v1877_v44  ;;  %v1432_v12 = vpop.f32.mrb[64].mxu0  ;;  %v3239_v48 = vpop.f32.mrb[64].mxu1 }
 0x24c   : > { %v1434_v49 = vpop.f32.mrb[65].mxu0  ;;  %v1721_v52 = vpop.f32.mrb[65].mxu1 }
 0x24d   : > { %v1722_v53 = vadd.f32 %v1721_v52, %v1432_v12  ;;  %v1435_v56 = vpop.f32.mrb[66].mxu0  ;;  %v3240_v26 = vpop.f32.mrb[66].mxu1  ;;  %v413_v12 = vld [vmem:[#allocation2 + $0x138] sm:$0xff] }
 0x24e   : > { %v1437_v57 = vpop.f32.mrb[67].mxu0  ;;  %v1724_v10 = vpop.f32.mrb[67].mxu1 }
 0x24f   : > { %v1880_v0 = vadd.f32 %v1722_v53, %v406_v30  ;;  %v1725_v18 = vadd.f32 %v1724_v10, %v1435_v56  ;;  %v414_v57 = vld [vmem:[#allocation2 + $0x140] sm:$0xff]  ;;  %v424_v10 = vld [vmem:[#allocation2 + $0x190] sm:$0xff] }
 0x251   : > { %1944 = vst [vmem:[#allocation2 + $0x100] sm:$0xff] %v1880_v0  ;;  %v1881_v50 = vadd.f32 %v1725_v18, %v407_v61 }
 0x253   : > { %1945 = vst [vmem:[#allocation2 + $0x108] sm:$0xff] %v1881_v50  ;;  %v1440_v62 = vpop.f32.mrb[68].mxu0  ;;  %v3243_v4 = vpop.f32.mrb[68].mxu1 }
 0x254   : > { %v1730_v5 = vadd.f32 %v3239_v48, %v1440_v62  ;;  %v1442_v8 = vpop.f32.mrb[69].mxu0  ;;  %v1737_v9 = vpop.f32.mrb[69].mxu1  ;;  %v422_v62 = vld [vmem:[#allocation2 + $0x180] sm:$0xff] }
 0x255   : > { %v1443_v17 = vpop.f32.mrb[70].mxu0  ;;  %v3244_v22 = vpop.f32.mrb[70].mxu1  ;;  %v415_v8 = vld [vmem:[#allocation2 + $0x148] sm:$0xff] }
 0x256   : > { %v1882_v16 = vadd.f32 %v1730_v5, %v408_v42  ;;  %v1733_v14 = vadd.f32 %v3240_v26, %v1443_v17  ;;  %v1445_v46 = vpop.f32.mrb[71].mxu0  ;;  %v1740_v20 = vpop.f32.mrb[71].mxu1 }
 0x258   : > { %1946 = vst [vmem:[#allocation2 + $0x110] sm:$0xff] %v1882_v16  ;;  %v1883_v21 = vadd.f32 %v1733_v14, %v409_v54  ;;  %v425_v54 = vld [vmem:[#allocation2 + $0x198] sm:$0xff] }
 0x25a   : > { %1947 = vst [vmem:[#allocation2 + $0x118] sm:$0xff] %v1883_v21  ;;  %v423_v21 = vld [vmem:[#allocation2 + $0x188] sm:$0xff] }
 0x25b   : > { %v1448_v25 = vpop.f32.mrb[72].mxu0  ;;  %v4329_v28 = vpop.f32.mrb[72].mxu1 }
 0x25c   : > { %v1738_v1 = vadd.f32 %v1737_v9, %v1448_v25  ;;  %v1450_v29 = vpop.f32.mrb[73].mxu0  ;;  %v1753_v2 = vpop.f32.mrb[73].mxu1 }
 0x25d   : > { %v1451_v32 = vpop.f32.mrb[74].mxu0  ;;  %v4331_v60 = vpop.f32.mrb[74].mxu1 }
 0x25e   : > { %v1884_v34 = vadd.f32 %v1738_v1, %v410_v24  ;;  %v1741_v33 = vadd.f32 %v1740_v20, %v1451_v32  ;;  %v1453_v36 = vpop.f32.mrb[75].mxu0  ;;  %v1756_v37 = vpop.f32.mrb[75].mxu1  ;;  %v428_v32 = vld [vmem:[#allocation2 + $0x1b0] sm:$0xff] }
 0x260   : > { %1948 = vst [vmem:[#allocation2 + $0x120] sm:$0xff] %v1884_v34  ;;  %v1885_v13 = vadd.f32 %v1741_v33, %v411_v58 }
 0x262   : > { %1949 = vst [vmem:[#allocation2 + $0x128] sm:$0xff] %v1885_v13 }
 0x263   : > { %v1456_v45 = vpop.f32.mrb[76].mxu0  ;;  %v4333_v6 = vpop.f32.mrb[76].mxu1 }
 0x264   : > { %v1746_v41 = vadd.f32 %v3243_v4, %v1456_v45  ;;  %v1458_v38 = vpop.f32.mrb[77].mxu0  ;;  %v4335_v44 = vpop.f32.mrb[77].mxu1 }
 0x265   : > { %v1459_v48 = vpop.f32.mrb[78].mxu0  ;;  %v4337_v49 = vpop.f32.mrb[78].mxu1 }
 0x266   : > { %v1886_v30 = vadd.f32 %v1746_v41, %v412_v40  ;;  %v1749_v52 = vadd.f32 %v3244_v22, %v1459_v48  ;;  %v1461_v53 = vpop.f32.mrb[79].mxu0  ;;  %v4339_v56 = vpop.f32.mrb[79].mxu1  ;;  %v417_v40 = vld [vmem:[#allocation2 + $0x158] sm:$0xff] }
 0x267   : > { %v429_v41 = vld [vmem:[#allocation2 + $0x1b8] sm:$0xff] }
 0x268   : > { %1950 = vst [vmem:[#allocation2 + $0x130] sm:$0xff] %v1886_v30  ;;  %v1887_v26 = vadd.f32 %v1749_v52, %v413_v12 }
 0x26a   : > { %1951 = vst [vmem:[#allocation2 + $0x138] sm:$0xff] %v1887_v26  ;;  %v427_v26 = vld [vmem:[#allocation2 + $0x1a8] sm:$0xff] }
 0x26b   : > { %v1464_v61 = vpop.f32.mrb[80].mxu0  ;;  %v3255_v0 = vpop.f32.mrb[80].mxu1 }
 0x26c   : > { %v1754_v18 = vadd.f32 %v1753_v2, %v1464_v61  ;;  %v1794_v50 = vadd.f32 %v3255_v0, %v4242_v3  ;;  %v1466_v42 = vpop.f32.mrb[81].mxu0  ;;  %v1785_v4 = vpop.f32.mrb[81].mxu1  ;;  %v416_v2 = vld [vmem:[#allocation2 + $0x150] sm:$0xff]  ;;  %v418_v0 = vld [vmem:[#allocation2 + $0x160] sm:$0xff] }
 0x26d   : > { %v1786_v5 = vadd.f32 %v1785_v4, %v4236_v59  ;;  %v1467_v9 = vpop.f32.mrb[82].mxu0  ;;  %v3256_v17 = vpop.f32.mrb[82].mxu1  ;;  %v430_v4 = vld [vmem:[#allocation2 + $0x1c0] sm:$0xff] }
 0x26e   : > { %v1888_v22 = vadd.f32 %v1754_v18, %v414_v57  ;;  %v1898_v16 = vadd.f32 %v1794_v50, %v424_v10  ;;  %v1757_v14 = vadd.f32 %v1756_v37, %v1467_v9  ;;  %v1797_v46 = vadd.f32 %v3256_v17, %v4246_v7  ;;  %v1469_v20 = vpop.f32.mrb[83].mxu0  ;;  %v1788_v24 = vpop.f32.mrb[83].mxu1  ;;  %v426_v37 = vld [vmem:[#allocation2 + $0x1a0] sm:$0xff] }
 0x26f   : > { %v1896_v25 = vadd.f32 %v1786_v5, %v422_v62  ;;  %v1789_v3 = vadd.f32 %v1788_v24, %v4240_v63 }
 0x270   : > { %1952 = vst [vmem:[#allocation2 + $0x140] sm:$0xff] %v1888_v22  ;;  %1962 = vst [vmem:[#allocation2 + $0x190] sm:$0xff] %v1898_v16  ;;  %v1889_v1 = vadd.f32 %v1757_v14, %v415_v8  ;;  %v1899_v29 = vadd.f32 %v1797_v46, %v425_v54  ;;  %v419_v8 = vld [vmem:[#allocation2 + $0x168] sm:$0xff]  ;;  %v433_v54 = vld [vmem:[#allocation2 + $0x1d8] sm:$0xff] }
 0x271   : > { %1960 = vst [vmem:[#allocation2 + $0x180] sm:$0xff] %v1896_v25  ;;  %v1897_v59 = vadd.f32 %v1789_v3, %v423_v21  ;;  %v431_v21 = vld [vmem:[#allocation2 + $0x1c8] sm:$0xff] }
 0x272   : > { %1953 = vst [vmem:[#allocation2 + $0x148] sm:$0xff] %v1889_v1  ;;  %1963 = vst [vmem:[#allocation2 + $0x198] sm:$0xff] %v1899_v29  ;;  %v420_v1 = vld [vmem:[#allocation2 + $0x170] sm:$0xff] }
 0x273   : > { %1961 = vst [vmem:[#allocation2 + $0x188] sm:$0xff] %v1897_v59  ;;  %v1472_v58 = vpop.f32.mrb[84].mxu0  ;;  %v3259_v34 = vpop.f32.mrb[84].mxu1 }
 0x274   : > { %v1762_v7 = vadd.f32 %v4329_v28, %v1472_v58  ;;  %v1810_v33 = vadd.f32 %v3259_v34, %v4258_v19  ;;  %v1474_v36 = vpop.f32.mrb[85].mxu0  ;;  %v1801_v63 = vpop.f32.mrb[85].mxu1 }
 0x275   : > { %v1802_v13 = vadd.f32 %v1801_v63, %v4250_v11  ;;  %v1475_v45 = vpop.f32.mrb[86].mxu0  ;;  %v3260_v38 = vpop.f32.mrb[86].mxu1  ;;  %v437_v36 = vld [vmem:[#allocation2 + $0x1f8] sm:$0xff] }
 0x276   : > { %v1890_v12 = vadd.f32 %v1762_v7, %v416_v2  ;;  %v1902_v48 = vadd.f32 %v1810_v33, %v428_v32  ;;  %v1765_v30 = vadd.f32 %v4331_v60, %v1475_v45  ;;  %v1813_v52 = vadd.f32 %v3260_v38, %v4262_v23  ;;  %v1477_v53 = vpop.f32.mrb[87].mxu0  ;;  %v1804_v28 = vpop.f32.mrb[87].mxu1  ;;  %v432_v60 = vld [vmem:[#allocation2 + $0x1d0] sm:$0xff]  ;;  %v434_v32 = vld [vmem:[#allocation2 + $0x1e0] sm:$0xff]  ;;  %v421_v7 = vld [vmem:[#allocation2 + $0x178] sm:$0xff] }
 0x277   : > { %v1900_v57 = vadd.f32 %v1802_v13, %v426_v37  ;;  %v1805_v19 = vadd.f32 %v1804_v28, %v4254_v15  ;;  %v435_v38 = vld [vmem:[#allocation2 + $0x1e8] sm:$0xff]  ;;  %v1982_v28 = vld [vmem:[#allocation2 + $0x10] sm:$0xff] (!%p2821_p12) }
 0x278   : > { %1954 = vst [vmem:[#allocation2 + $0x150] sm:$0xff] %v1890_v12  ;;  %1966 = vst [vmem:[#allocation2 + $0x1b0] sm:$0xff] %v1902_v48  ;;  %v1891_v61 = vadd.f32 %v1765_v30, %v417_v40  ;;  %v1903_v11 = vadd.f32 %v1813_v52, %v429_v41  ;;  %v4364_v52 = vld [vmem:[#allocation8] ss:$0 sm:$0xff] (!%p2821_p12) }
 0x279   : > { %1964 = vst [vmem:[#allocation2 + $0x1a0] sm:$0xff] %v1900_v57  ;;  %v1901_v10 = vadd.f32 %v1805_v19, %v427_v26  ;;  %v4368_v26 = vld [vmem:[#allocation9] ss:$0 sm:$0xff] (!%p2821_p12)  ;;  %v1983_v57 = vld [vmem:[#allocation2 + $0x18] sm:$0xff] (!%p2821_p12)  ;;  %v2053_v19 = vmul.f32 (!%p2821_p12), %v4364_v52, %v1982_v28  ;;  %v1998_v28 = vld [vmem:[#allocation2 + $0x90] sm:$0xff] (!%p2821_p12) }
 0x27a   : > { %1955 = vst [vmem:[#allocation2 + $0x158] sm:$0xff] %v1891_v61  ;;  %1967 = vst [vmem:[#allocation2 + $0x1b8] sm:$0xff] %v1903_v11  ;;  %v2054_v61 = vmul.f32 (!%p2821_p12), %v4364_v52, %v1983_v57  ;;  %v1984_v11 = vld [vmem:[#allocation2 + $0x20] sm:$0xff] (!%p2821_p12)  ;;  %v1999_v57 = vld [vmem:[#allocation2 + $0x98] sm:$0xff] (!%p2821_p12) }
 0x27b   : > { %1965 = vst [vmem:[#allocation2 + $0x1a8] sm:$0xff] %v1901_v10  ;;  %v1480_v18 = vpop.f32.mrb[88].mxu0  ;;  %v3263_v50 = vpop.f32.mrb[88].mxu1  ;;  %v1985_v10 = vld [vmem:[#allocation2 + $0x28] sm:$0xff] (!%p2821_p12) }
 0x27c   : > { %v1770_v23 = vadd.f32 %v4335_v44, %v1480_v18  ;;  %v1826_v42 = vadd.f32 %v3263_v50, %v4274_v35  ;;  %v1482_v62 = vpop.f32.mrb[89].mxu0  ;;  %v1817_v15 = vpop.f32.mrb[89].mxu1  ;;  %v2055_v50 = vmul.f32 (!%p2821_p12), %v4364_v52, %v1984_v11 }
 0x27d   : > { %v1818_v5 = vadd.f32 %v1817_v15, %v4266_v27  ;;  %v1483_v9 = vpop.f32.mrb[90].mxu0  ;;  %v3264_v17 = vpop.f32.mrb[90].mxu1  ;;  %v2124_v62 = vadd.f32 (!%p2821_p12), %v4368_v26, %v2053_v19 }
 0x27e   : > { %v1892_v22 = vadd.f32 %v1770_v23, %v418_v0  ;;  %v1906_v16 = vadd.f32 %v1826_v42, %v432_v60  ;;  %v1773_v14 = vadd.f32 %v4339_v56, %v1483_v9  ;;  %v1829_v46 = vadd.f32 %v3264_v17, %v4278_v39  ;;  %v1485_v20 = vpop.f32.mrb[91].mxu0  ;;  %v1820_v44 = vpop.f32.mrb[91].mxu1  ;;  %v436_v56 = vld [vmem:[#allocation2 + $0x1f0] sm:$0xff]  ;;  %v1987_v42 = vld [vmem:[#allocation2 + $0x38] sm:$0xff] (!%p2821_p12) }
 0x27f   : > { %v1904_v24 = vadd.f32 %v1818_v5, %v430_v4  ;;  %v1821_v35 = vadd.f32 %v1820_v44, %v4270_v31  ;;  %v1986_v0 = vld [vmem:[#allocation2 + $0x30] sm:$0xff] (!%p2821_p12)  ;;  %v2056_v23 = vmul.f32 (!%p2821_p12), %v4364_v52, %v1985_v10  ;;  %v2125_v4 = vadd.f32 (!%p2821_p12), %v4368_v26, %v2054_v61 }
 0x280   : > { %1956 = vst [vmem:[#allocation2 + $0x160] sm:$0xff] %v1892_v22  ;;  %1970 = vst [vmem:[#allocation2 + $0x1d0] sm:$0xff] %v1906_v16  ;;  %v1893_v25 = vadd.f32 %v1773_v14, %v419_v8  ;;  %v1907_v27 = vadd.f32 %v1829_v46, %v433_v54  ;;  %v2057_v15 = vmul.f32 (!%p2821_p12), %v4364_v52, %v1986_v0  ;;  %v1988_v8 = vld [vmem:[#allocation2 + $0x40] sm:$0xff] (!%p2821_p12)  ;;  %v1989_v16 = vld [vmem:[#allocation2 + $0x48] sm:$0xff] (!%p2821_p12)  ;;  %v2188_v14 = vmax.f32 (!%p2821_p12), %v2124_v62, 0.0 }
 0x281   : > { %1968 = vst [vmem:[#allocation2 + $0x1c0] sm:$0xff] %v1904_v24  ;;  %v1905_v3 = vadd.f32 %v1821_v35, %v431_v21  ;;  %v2058_v5 = vmul.f32 (!%p2821_p12), %v4364_v52, %v1987_v42  ;;  %v2126_v17 = vadd.f32 (!%p2821_p12), %v4368_v26, %v2055_v50  ;;  %v2127_v22 = vadd.f32 (!%p2821_p12), %v4368_v26, %v2056_v23  ;;  %v1990_v44 = vld [vmem:[#allocation2 + $0x50] sm:$0xff] (!%p2821_p12)  ;;  %v1991_v24 = vld [vmem:[#allocation2 + $0x58] sm:$0xff] (!%p2821_p12)  ;;  %v2000_v0 = vld [vmem:[#allocation2 + $0xa0] sm:$0xff] (!%p2821_p12) }
 0x282   : > { %1957 = vst [vmem:[#allocation2 + $0x168] sm:$0xff] %v1893_v25  ;;  %1971 = vst [vmem:[#allocation2 + $0x1d8] sm:$0xff] %v1907_v27  ;;  %v2189_v46 = vmax.f32 (!%p2821_p12), %v2125_v4, 0.0  ;;  %v2128_v20 = vadd.f32 (!%p2821_p12), %v4368_v26, %v2057_v15  ;;  %v2002_v62 = vld [vmem:[#allocation2 + $0xb0] sm:$0xff] (!%p2821_p12) }
 0x283   : > { %1969 = vst [vmem:[#allocation2 + $0x1c8] sm:$0xff] %v1905_v3  ;;  %v1488_v29 = vpop.f32.mrb[92].mxu0  ;;  %v3267_v59 = vpop.f32.mrb[92].mxu1  ;;  %v2129_v21 = vadd.f32 (!%p2821_p12), %v4368_v26, %v2058_v5  ;;  %v2190_v25 = vmax.f32 (!%p2821_p12), %v2126_v17, 0.0  ;;  %v2191_v27 = vmax.f32 (!%p2821_p12), %v2127_v22, 0.0  ;;  %v2059_v3 = vmul.f32 (!%p2821_p12), %v4364_v52, %v1988_v8 }
 0x284   : > { %v1778_v39 = vadd.f32 %v4333_v6, %v1488_v29  ;;  %v1842_v2 = vadd.f32 %v3267_v59, %v4290_v51  ;;  %v1490_v58 = vpop.f32.mrb[93].mxu0  ;;  %v1833_v31 = vpop.f32.mrb[93].mxu1  ;;  %v1993_v29 = vld [vmem:[#allocation2 + $0x68] sm:$0xff] (!%p2821_p12)  ;;  %v2192_v59 = vmax.f32 (!%p2821_p12), %v2128_v20, 0.0  ;;  %v2069_v5 = vmul.f32 (!%p2821_p12), %v4364_v52, %v1998_v28 }
 0x285   : > { %v1834_v34 = vadd.f32 %v1833_v31, %v4282_v43  ;;  %v1491_v33 = vpop.f32.mrb[94].mxu0  ;;  %v3268_v37 = vpop.f32.mrb[94].mxu1  ;;  %1979 = sbr.rel (%p2821_p12) target bundleno = 704 (0x2c0), region = 60  ;;  %v1994_v58 = vld [vmem:[#allocation2 + $0x70] sm:$0xff] (!%p2821_p12)  ;;  %v2130_v31 = vadd.f32 (!%p2821_p12), %v4368_v26, %v2059_v3  ;;  %v2070_v8 = vmul.f32 (!%p2821_p12), %v4364_v52, %v1999_v57  ;;  %v2071_v22 = vmul.f32 (!%p2821_p12), %v4364_v52, %v2000_v0  ;;  %v2005_v3 = vld [vmem:[#allocation2 + $0xc8] sm:$0xff] (!%p2821_p12) }
 0x286   : > { %v1894_v63 = vadd.f32 %v1778_v39, %v420_v1  ;;  %v1910_v13 = vadd.f32 %v1842_v2, %v436_v56  ;;  %v1781_v40 = vadd.f32 %v4337_v49, %v1491_v33  ;;  %v1845_v45 = vadd.f32 %v3268_v37, %v4294_v55  ;;  %v1493_v41 = vpop.f32.mrb[95].mxu0  ;;  %v1836_v6 = vpop.f32.mrb[95].mxu1  ;;  %v1980_v49 = vld [vmem:[#allocation2] sm:$0xff] (!%p2821_p12)  ;;  %v1981_v55 = vld [vmem:[#allocation2 + $0x8] sm:$0xff] (!%p2821_p12)  ;;  %v1995_v33 = vld [vmem:[#allocation2 + $0x78] sm:$0xff] (!%p2821_p12) }
 0x287   : > { %v1908_v12 = vadd.f32 %v1834_v34, %v434_v32  ;;  %v1837_v51 = vadd.f32 %v1836_v6, %v4286_v47  ;;  %v2051_v53 = vmul.f32 (!%p2821_p12), %v4364_v52, %v1980_v49  ;;  %v2052_v47 = vmul.f32 (!%p2821_p12), %v4364_v52, %v1981_v55  ;;  %v1992_v1 = vld [vmem:[#allocation2 + $0x60] sm:$0xff] (!%p2821_p12) }
 0x288   : > { %1958 = vst [vmem:[#allocation2 + $0x170] sm:$0xff] %v1894_v63  ;;  %1974 = vst [vmem:[#allocation2 + $0x1f0] sm:$0xff] %v1910_v13  ;;  %v1895_v48 = vadd.f32 %v1781_v40, %v421_v7  ;;  %v1911_v43 = vadd.f32 %v1845_v45, %v437_v36  ;;  %v2966_v56 = vpack.c.bf16 (!%p2821_p12), %v2189_v46, %v2188_v14  ;;  %v2193_v39 = vmax.f32 (!%p2821_p12), %v2129_v21, 0.0  ;;  %v1996_v40 = vld [vmem:[#allocation2 + $0x80] sm:$0xff] (!%p2821_p12) }
 0x289   : > { %1972 = vst [vmem:[#allocation2 + $0x1e0] sm:$0xff] %v1908_v12  ;;  %v1909_v30 = vadd.f32 %v1837_v51, %v435_v38  ;;  %v2122_v18 = vadd.f32 (!%p2821_p12), %v4368_v26, %v2051_v53  ;;  %v2123_v60 = vadd.f32 (!%p2821_p12), %v4368_v26, %v2052_v47  ;;  %v2060_v2 = vmul.f32 (!%p2821_p12), %v4364_v52, %v1989_v16  ;;  %v2004_v14 = vld [vmem:[#allocation2 + $0xc0] sm:$0xff] (!%p2821_p12) }
 0x28a   : > { %1959 = vst [vmem:[#allocation2 + $0x178] sm:$0xff] %v1895_v48  ;;  %1975 = vst [vmem:[#allocation2 + $0x1f8] sm:$0xff] %v1911_v43  ;;  %v2971_v32 = vpack.c.bf16 (!%p2821_p12), %v2191_v27, %v2190_v25  ;;  %v2061_v34 = vmul.f32 (!%p2821_p12), %v4364_v52, %v1990_v44  ;;  %v2062_v7 = vmul.f32 (!%p2821_p12), %v4364_v52, %v1991_v24  ;;  %v2194_v45 = vmax.f32 (!%p2821_p12), %v2130_v31, 0.0 }
 0x28b   : > { %1973 = vst [vmem:[#allocation2 + $0x1e8] sm:$0xff] %v1909_v30  ;;  %v2186_v9 = vmax.f32 (!%p2821_p12), %v2122_v18, 0.0  ;;  %v2187_v54 = vmax.f32 (!%p2821_p12), %v2123_v60, 0.0  ;;  %3118 = vst [vmem:[#allocation11 + $0x8] sm:$0xff] (!%p2821_p12), %v2966_v56   ;;  %v2976_v36 = vpack.c.bf16 (!%p2821_p12), %v2193_v39, %v2192_v59  ;;  %v2131_v37 = vadd.f32 (!%p2821_p12), %v4368_v26, %v2060_v2  ;;  %v1997_v30 = vld [vmem:[#allocation2 + $0x88] sm:$0xff] (!%p2821_p12)  ;;  %v2006_v39 = vld [vmem:[#allocation2 + $0xd0] sm:$0xff] (!%p2821_p12) }
 0x28c   : > { %v2063_v63 = vmul.f32 %v4364_v52, %v1992_v1  ;;  %v2064_v13 = vmul.f32 %v4364_v52, %v1993_v29  ;;  %3119 = vst [vmem:[#allocation11 + $0x10] sm:$0xff] %v2971_v32   ;;  %v2132_v41 = vadd.f32 %v4368_v26, %v2061_v34  ;;  %v2133_v38 = vadd.f32 %v4368_v26, %v2062_v7  ;;  %v2001_v18 = vld [vmem:[#allocation2 + $0xa8] sm:$0xff]  ;;  %v2007_v2 = vld [vmem:[#allocation2 + $0xd8] sm:$0xff]  ;;  %v2008_v7 = vld [vmem:[#allocation2 + $0xe0] sm:$0xff] }
 0x28d   : > { %v2961_v35 = vpack.c.bf16 %v2187_v54, %v2186_v9  ;;  %v2065_v6 = vmul.f32 %v4364_v52, %v1994_v58  ;;  %3120 = vst [vmem:[#allocation11 + $0x18] sm:$0xff] %v2976_v36   ;;  %v2195_v12 = vmax.f32 %v2131_v37, 0.0  ;;  %v2066_v43 = vmul.f32 %v4364_v52, %v1995_v33  ;;  %v2003_v9 = vld [vmem:[#allocation2 + $0xb8] sm:$0xff]  ;;  %v2009_v33 = vld [vmem:[#allocation2 + $0xe8] sm:$0xff] }
 0x28e   : > { %v2134_v51 = vadd.f32 %v4368_v26, %v2063_v63  ;;  %v2135_v48 = vadd.f32 %v4368_v26, %v2064_v13  ;;  %v2196_v49 = vmax.f32 %v2132_v41, 0.0  ;;  %v2197_v55 = vmax.f32 %v2133_v38, 0.0 }
 0x28f   : > { %2962 = vst [vmem:[#allocation11] sm:$0xff] %v2961_v35   ;;  %v2136_v53 = vadd.f32 %v4368_v26, %v2065_v6  ;;  %v2067_v47 = vmul.f32 %v4364_v52, %v1996_v40  ;;  %v2981_v19 = vpack.c.bf16 %v2195_v12, %v2194_v45  ;;  %v2137_v10 = vadd.f32 %v4368_v26, %v2066_v43  ;;  %v2010_v40 = vld [vmem:[#allocation2 + $0xf0] sm:$0xff]  ;;  %v2011_v12 = vld [vmem:[#allocation2 + $0xf8] sm:$0xff] }
 0x290   : > { %v2198_v61 = vmax.f32 %v2134_v51, 0.0  ;;  %v2199_v11 = vmax.f32 %v2135_v48, 0.0  ;;  %v2986_v60 = vpack.c.bf16 %v2197_v55, %v2196_v49  ;;  %v2068_v23 = vmul.f32 %v4364_v52, %v1997_v30  ;;  %v2012_v49 = vld [vmem:[#allocation2 + $0x100] sm:$0xff] }
 0x291   : > { %v2200_v50 = vmax.f32 %v2136_v53, 0.0  ;;  %v2138_v42 = vadd.f32 %v4368_v26, %v2067_v47  ;;  %3121 = vst [vmem:[#allocation11 + $0x20] sm:$0xff] %v2981_v19   ;;  %v2201_v15 = vmax.f32 %v2137_v10, 0.0  ;;  %v2072_v16 = vmul.f32 %v4364_v52, %v2001_v18  ;;  %v2013_v10 = vld [vmem:[#allocation2 + $0x108] sm:$0xff] }
 0x292   : > { %v2991_v4 = vpack.c.bf16 %v2199_v11, %v2198_v61  ;;  %3122 = vst [vmem:[#allocation11 + $0x28] sm:$0xff] %v2986_v60   ;;  %v2139_v54 = vadd.f32 %v4368_v26, %v2068_v23  ;;  %v2140_v20 = vadd.f32 %v4368_v26, %v2069_v5  ;;  %v2141_v21 = vadd.f32 %v4368_v26, %v2070_v8  ;;  %v2014_v23 = vld [vmem:[#allocation2 + $0x110] sm:$0xff]  ;;  %v2016_v8 = vld [vmem:[#allocation2 + $0x120] sm:$0xff] }
 0x293   : > { %v2202_v17 = vmax.f32 %v2138_v42, 0.0  ;;  %v2996_v46 = vpack.c.bf16 %v2201_v15, %v2200_v50  ;;  %v2073_v44 = vmul.f32 %v4364_v52, %v2002_v62  ;;  %v2142_v35 = vadd.f32 %v4368_v26, %v2071_v22  ;;  %v2015_v42 = vld [vmem:[#allocation2 + $0x118] sm:$0xff] }
 0x294   : > { %3123 = vst [vmem:[#allocation11 + $0x30] sm:$0xff] %v2991_v4   ;;  %v2203_v24 = vmax.f32 %v2139_v54, 0.0  ;;  %v2143_v25 = vadd.f32 %v4368_v26, %v2072_v16  ;;  %v2074_v27 = vmul.f32 %v4364_v52, %v2003_v9  ;;  %v2204_v1 = vmax.f32 %v2140_v20, 0.0  ;;  %v2017_v9 = vld [vmem:[#allocation2 + $0x128] sm:$0xff] }
 0x295   : > { %3124 = vst [vmem:[#allocation11 + $0x38] sm:$0xff] %v2996_v46   ;;  %v2205_v29 = vmax.f32 %v2141_v21, 0.0  ;;  %v2144_v56 = vadd.f32 %v4368_v26, %v2073_v44  ;;  %v2075_v59 = vmul.f32 %v4364_v52, %v2004_v14  ;;  %v2206_v32 = vmax.f32 %v2142_v35, 0.0  ;;  %v2018_v14 = vld [vmem:[#allocation2 + $0x130] sm:$0xff] }
 0x296   : > { %v3001_v58 = vpack.c.bf16 %v2203_v24, %v2202_v17  ;;  %v2207_v31 = vmax.f32 %v2143_v25, 0.0  ;;  %v2145_v34 = vadd.f32 %v4368_v26, %v2074_v27  ;;  %v2076_v63 = vmul.f32 %v4364_v52, %v2005_v3  ;;  %v2019_v24 = vld [vmem:[#allocation2 + $0x138] sm:$0xff] }
 0x297   : > { %v3006_v36 = vpack.c.bf16 %v2205_v29, %v2204_v1  ;;  %v2208_v37 = vmax.f32 %v2144_v56, 0.0  ;;  %v2146_v13 = vadd.f32 %v4368_v26, %v2075_v59  ;;  %v2077_v38 = vmul.f32 %v4364_v52, %v2006_v39  ;;  %v2020_v1 = vld [vmem:[#allocation2 + $0x140] sm:$0xff] }
 0x298   : > { %3125 = vst [vmem:[#allocation11 + $0x40] sm:$0xff] %v3001_v58   ;;  %v3011_v45 = vpack.c.bf16 %v2207_v31, %v2206_v32  ;;  %v2209_v41 = vmax.f32 %v2145_v34, 0.0  ;;  %v2078_v6 = vmul.f32 %v4364_v52, %v2007_v2  ;;  %v2147_v51 = vadd.f32 %v4368_v26, %v2076_v63  ;;  %v2021_v34 = vld [vmem:[#allocation2 + $0x148] sm:$0xff]  ;;  %v2022_v63 = vld [vmem:[#allocation2 + $0x150] sm:$0xff] }
 0x299   : > { %3126 = vst [vmem:[#allocation11 + $0x48] sm:$0xff] %v3006_v36   ;;  %v2210_v48 = vmax.f32 %v2146_v13, 0.0  ;;  %v2079_v43 = vmul.f32 %v4364_v52, %v2008_v7  ;;  %v2080_v30 = vmul.f32 %v4364_v52, %v2009_v33  ;;  %v2148_v53 = vadd.f32 %v4368_v26, %v2077_v38  ;;  %v2023_v13 = vld [vmem:[#allocation2 + $0x158] sm:$0xff] }
 0x29a   : > { %3127 = vst [vmem:[#allocation11 + $0x50] sm:$0xff] %v3011_v45   ;;  %v3016_v55 = vpack.c.bf16 %v2209_v41, %v2208_v37  ;;  %v2149_v47 = vadd.f32 %v4368_v26, %v2078_v6  ;;  %v2081_v28 = vmul.f32 %v4364_v52, %v2010_v40  ;;  %v2211_v57 = vmax.f32 %v2147_v51, 0.0  ;;  %v2024_v6 = vld [vmem:[#allocation2 + $0x160] sm:$0xff] }
 0x29b   : > { %v2150_v19 = vadd.f32 %v4368_v26, %v2079_v43  ;;  %v2151_v61 = vadd.f32 %v4368_v26, %v2080_v30  ;;  %v2082_v11 = vmul.f32 %v4364_v52, %v2011_v12  ;;  %v2212_v0 = vmax.f32 %v2148_v53, 0.0  ;;  %v2025_v12 = vld [vmem:[#allocation2 + $0x168] sm:$0xff] }
 0x29c   : > { %3128 = vst [vmem:[#allocation11 + $0x58] sm:$0xff] %v3016_v55   ;;  %v2213_v18 = vmax.f32 %v2149_v47, 0.0  ;;  %v2152_v60 = vadd.f32 %v4368_v26, %v2081_v28  ;;  %v2083_v50 = vmul.f32 %v4364_v52, %v2012_v49  ;;  %v3021_v62 = vpack.c.bf16 %v2211_v57, %v2210_v48  ;;  %v2026_v49 = vld [vmem:[#allocation2 + $0x170] sm:$0xff]  ;;  %v2027_v57 = vld [vmem:[#allocation2 + $0x178] sm:$0xff] }
 0x29d   : > { %v2214_v4 = vmax.f32 %v2150_v19, 0.0  ;;  %v2215_v15 = vmax.f32 %v2151_v61, 0.0  ;;  %v2153_v5 = vadd.f32 %v4368_v26, %v2082_v11  ;;  %v2084_v22 = vmul.f32 %v4364_v52, %v2013_v10 }
 0x29e   : > { %v3026_v54 = vpack.c.bf16 %v2213_v18, %v2212_v0  ;;  %v2216_v17 = vmax.f32 %v2152_v60, 0.0  ;;  %v2154_v16 = vadd.f32 %v4368_v26, %v2083_v50  ;;  %3129 = vst [vmem:[#allocation11 + $0x60] sm:$0xff] %v3021_v62   ;;  %v2085_v21 = vmul.f32 %v4364_v52, %v2014_v23  ;;  %v2028_v0 = vld [vmem:[#allocation2 + $0x180] sm:$0xff] }
 0x29f   : > { %v3031_v46 = vpack.c.bf16 %v2215_v15, %v2214_v4  ;;  %v2217_v20 = vmax.f32 %v2153_v5, 0.0  ;;  %v2086_v44 = vmul.f32 %v4364_v52, %v2015_v42  ;;  %v2155_v35 = vadd.f32 %v4368_v26, %v2084_v22  ;;  %v2029_v5 = vld [vmem:[#allocation2 + $0x188] sm:$0xff]  ;;  %v2030_v22 = vld [vmem:[#allocation2 + $0x190] sm:$0xff] }
 0x2a0   : > { %3130 = vst [vmem:[#allocation11 + $0x68] sm:$0xff] %v3026_v54   ;;  %v2218_v25 = vmax.f32 %v2154_v16, 0.0  ;;  %v2087_v27 = vmul.f32 %v4364_v52, %v2016_v8  ;;  %v2088_v3 = vmul.f32 %v4364_v52, %v2017_v9  ;;  %v2156_v56 = vadd.f32 %v4368_v26, %v2085_v21  ;;  %v2031_v16 = vld [vmem:[#allocation2 + $0x198] sm:$0xff] }
 0x2a1   : > { %3131 = vst [vmem:[#allocation11 + $0x70] sm:$0xff] %v3031_v46   ;;  %v3036_v29 = vpack.c.bf16 %v2217_v20, %v2216_v17  ;;  %v2157_v59 = vadd.f32 %v4368_v26, %v2086_v44  ;;  %v2089_v39 = vmul.f32 %v4364_v52, %v2018_v14  ;;  %v2219_v2 = vmax.f32 %v2155_v35, 0.0  ;;  %v2032_v44 = vld [vmem:[#allocation2 + $0x1a0] sm:$0xff] }
 0x2a2   : > { %v2158_v58 = vadd.f32 %v4368_v26, %v2087_v27  ;;  %v2159_v32 = vadd.f32 %v4368_v26, %v2088_v3  ;;  %v2090_v31 = vmul.f32 %v4364_v52, %v2019_v24  ;;  %v2220_v7 = vmax.f32 %v2156_v56, 0.0  ;;  %v2033_v24 = vld [vmem:[#allocation2 + $0x1a8] sm:$0xff] }
 0x2a3   : > { %3132 = vst [vmem:[#allocation11 + $0x78] sm:$0xff] %v3036_v29   ;;  %v2221_v33 = vmax.f32 %v2157_v59, 0.0  ;;  %v2160_v36 = vadd.f32 %v4368_v26, %v2089_v39  ;;  %v2091_v37 = vmul.f32 %v4364_v52, %v2020_v1  ;;  %v3041_v40 = vpack.c.bf16 %v2219_v2, %v2218_v25  ;;  %v2034_v1 = vld [vmem:[#allocation2 + $0x1b0] sm:$0xff]  ;;  %v2035_v2 = vld [vmem:[#allocation2 + $0x1b8] sm:$0xff] }
 0x2a4   : > { %v2222_v45 = vmax.f32 %v2158_v58, 0.0  ;;  %v2223_v41 = vmax.f32 %v2159_v32, 0.0  ;;  %v2161_v38 = vadd.f32 %v4368_v26, %v2090_v31  ;;  %v2092_v43 = vmul.f32 %v4364_v52, %v2021_v34 }
 0x2a5   : > { %v3046_v51 = vpack.c.bf16 %v2221_v33, %v2220_v7  ;;  %v2224_v48 = vmax.f32 %v2160_v36, 0.0  ;;  %v2162_v30 = vadd.f32 %v4368_v26, %v2091_v37  ;;  %3133 = vst [vmem:[#allocation11 + $0x80] sm:$0xff] %v3041_v40   ;;  %v2093_v47 = vmul.f32 %v4364_v52, %v2022_v63  ;;  %v2036_v7 = vld [vmem:[#allocation2 + $0x1c0] sm:$0xff] }
 0x2a6   : > { %v3051_v55 = vpack.c.bf16 %v2223_v41, %v2222_v45  ;;  %v2225_v53 = vmax.f32 %v2161_v38, 0.0  ;;  %v2094_v28 = vmul.f32 %v4364_v52, %v2023_v13  ;;  %v2163_v19 = vadd.f32 %v4368_v26, %v2092_v43  ;;  %v2037_v38 = vld [vmem:[#allocation2 + $0x1c8] sm:$0xff]  ;;  %v2038_v43 = vld [vmem:[#allocation2 + $0x1d0] sm:$0xff] }
 0x2a7   : > { %3134 = vst [vmem:[#allocation11 + $0x88] sm:$0xff] %v3046_v51   ;;  %v2226_v61 = vmax.f32 %v2162_v30, 0.0  ;;  %v2095_v11 = vmul.f32 %v4364_v52, %v2024_v6  ;;  %v2096_v10 = vmul.f32 %v4364_v52, %v2025_v12  ;;  %v2164_v60 = vadd.f32 %v4368_v26, %v2093_v47  ;;  %v2039_v30 = vld [vmem:[#allocation2 + $0x1d8] sm:$0xff] }
 0x2a8   : > { %3135 = vst [vmem:[#allocation11 + $0x90] sm:$0xff] %v3051_v55   ;;  %v3056_v18 = vpack.c.bf16 %v2225_v53, %v2224_v48  ;;  %v2165_v50 = vadd.f32 %v4368_v26, %v2094_v28  ;;  %v2097_v23 = vmul.f32 %v4364_v52, %v2026_v49  ;;  %v2227_v42 = vmax.f32 %v2163_v19, 0.0  ;;  %v2040_v28 = vld [vmem:[#allocation2 + $0x1e0] sm:$0xff] }
 0x2a9   : > { %v2166_v62 = vadd.f32 %v4368_v26, %v2095_v11  ;;  %v2167_v4 = vadd.f32 %v4368_v26, %v2096_v10  ;;  %v2098_v15 = vmul.f32 %v4364_v52, %v2027_v57  ;;  %v2228_v8 = vmax.f32 %v2164_v60, 0.0  ;;  %v2041_v57 = vld [vmem:[#allocation2 + $0x1e8] sm:$0xff] }
 0x2aa   : > { %3136 = vst [vmem:[#allocation11 + $0x98] sm:$0xff] %v3056_v18   ;;  %v2229_v9 = vmax.f32 %v2165_v50, 0.0  ;;  %v2168_v54 = vadd.f32 %v4368_v26, %v2097_v23  ;;  %v2099_v17 = vmul.f32 %v4364_v52, %v2028_v0  ;;  %v3061_v14 = vpack.c.bf16 %v2227_v42, %v2226_v61  ;;  %v2042_v0 = vld [vmem:[#allocation2 + $0x1f0] sm:$0xff]  ;;  %v2043_v42 = vld [vmem:[#allocation2 + $0x1f8] sm:$0xff] }
 0x2ab   : > { %v2230_v46 = vmax.f32 %v2166_v62, 0.0  ;;  %v2231_v20 = vmax.f32 %v2167_v4, 0.0  ;;  %v2169_v21 = vadd.f32 %v4368_v26, %v2098_v15  ;;  %v2100_v27 = vmul.f32 %v4364_v52, %v2029_v5 }
 0x2ac   : > { %v3066_v35 = vpack.c.bf16 %v2229_v9, %v2228_v8  ;;  %v2232_v25 = vmax.f32 %v2168_v54, 0.0  ;;  %v2170_v3 = vadd.f32 %v4368_v26, %v2099_v17  ;;  %3137 = vst [vmem:[#allocation11 + $0xa0] sm:$0xff] %v3061_v14   ;;  %v2101_v59 = vmul.f32 %v4364_v52, %v2030_v22 }
 0x2ad   : > { %v3071_v29 = vpack.c.bf16 %v2231_v20, %v2230_v46  ;;  %v2233_v56 = vmax.f32 %v2169_v21, 0.0  ;;  %v2102_v39 = vmul.f32 %v4364_v52, %v2031_v16  ;;  %v2171_v58 = vadd.f32 %v4368_v26, %v2100_v27 }
 0x2ae   : > { %3138 = vst [vmem:[#allocation11 + $0xa8] sm:$0xff] %v3066_v35   ;;  %v2234_v32 = vmax.f32 %v2170_v3, 0.0  ;;  %v2103_v31 = vmul.f32 %v4364_v52, %v2032_v44  ;;  %v2104_v34 = vmul.f32 %v4364_v52, %v2033_v24  ;;  %v2172_v36 = vadd.f32 %v4368_v26, %v2101_v59 }
 0x2af   : > { %3139 = vst [vmem:[#allocation11 + $0xb0] sm:$0xff] %v3071_v29   ;;  %v3076_v33 = vpack.c.bf16 %v2233_v56, %v2232_v25  ;;  %v2173_v37 = vadd.f32 %v4368_v26, %v2102_v39  ;;  %v2105_v63 = vmul.f32 %v4364_v52, %v2034_v1  ;;  %v2235_v13 = vmax.f32 %v2171_v58, 0.0 }
 0x2b0   : > { %v2174_v40 = vadd.f32 %v4368_v26, %v2103_v31  ;;  %v2175_v45 = vadd.f32 %v4368_v26, %v2104_v34  ;;  %v2106_v41 = vmul.f32 %v4364_v52, %v2035_v2  ;;  %v2236_v6 = vmax.f32 %v2172_v36, 0.0 }
 0x2b1   : > { %3140 = vst [vmem:[#allocation11 + $0xb8] sm:$0xff] %v3076_v33   ;;  %v2237_v12 = vmax.f32 %v2173_v37, 0.0  ;;  %v2176_v51 = vadd.f32 %v4368_v26, %v2105_v63  ;;  %v2107_v48 = vmul.f32 %v4364_v52, %v2036_v7  ;;  %v3081_v49 = vpack.c.bf16 %v2235_v13, %v2234_v32 }
 0x2b2   : > { %v2238_v55 = vmax.f32 %v2174_v40, 0.0  ;;  %v2239_v53 = vmax.f32 %v2175_v45, 0.0  ;;  %v2177_v47 = vadd.f32 %v4368_v26, %v2106_v41  ;;  %v2108_v11 = vmul.f32 %v4364_v52, %v2037_v38 }
 0x2b3   : > { %v3086_v19 = vpack.c.bf16 %v2237_v12, %v2236_v6  ;;  %v2240_v61 = vmax.f32 %v2176_v51, 0.0  ;;  %v2178_v10 = vadd.f32 %v4368_v26, %v2107_v48  ;;  %3141 = vst [vmem:[#allocation11 + $0xc0] sm:$0xff] %v3081_v49   ;;  %v2109_v50 = vmul.f32 %v4364_v52, %v2038_v43 }
 0x2b4   : > { %v3091_v18 = vpack.c.bf16 %v2239_v53, %v2238_v55  ;;  %v2241_v60 = vmax.f32 %v2177_v47, 0.0  ;;  %v2110_v23 = vmul.f32 %v4364_v52, %v2039_v30  ;;  %v2179_v62 = vadd.f32 %v4368_v26, %v2108_v11 }
 0x2b5   : > { %3142 = vst [vmem:[#allocation11 + $0xc8] sm:$0xff] %v3086_v19   ;;  %v2242_v4 = vmax.f32 %v2178_v10, 0.0  ;;  %v2111_v15 = vmul.f32 %v4364_v52, %v2040_v28  ;;  %v2112_v5 = vmul.f32 %v4364_v52, %v2041_v57  ;;  %v2180_v9 = vadd.f32 %v4368_v26, %v2109_v50 }
 0x2b6   : > { %3143 = vst [vmem:[#allocation11 + $0xd0] sm:$0xff] %v3091_v18   ;;  %v3096_v8 = vpack.c.bf16 %v2241_v60, %v2240_v61  ;;  %v2181_v54 = vadd.f32 %v4368_v26, %v2110_v23  ;;  %v2113_v17 = vmul.f32 %v4364_v52, %v2042_v0  ;;  %v2243_v22 = vmax.f32 %v2179_v62, 0.0 }
 0x2b7   : > { %v2182_v16 = vadd.f32 %v4368_v26, %v2111_v15  ;;  %v2183_v14 = vadd.f32 %v4368_v26, %v2112_v5  ;;  %v2114_v46 = vmul.f32 %v4364_v52, %v2043_v42  ;;  %v2244_v20 = vmax.f32 %v2180_v9, 0.0 }
 0x2b8   : > { %3144 = vst [vmem:[#allocation11 + $0xd8] sm:$0xff] %v3096_v8   ;;  %v2245_v21 = vmax.f32 %v2181_v54, 0.0  ;;  %v2184_v44 = vadd.f32 %v4368_v26, %v2113_v17  ;;  %v3101_v24 = vpack.c.bf16 %v2243_v22, %v2242_v4 }
 0x2b9   : > { %v2246_v35 = vmax.f32 %v2182_v16, 0.0  ;;  %v2247_v25 = vmax.f32 %v2183_v14, 0.0  ;;  %v2185_v27 = vadd.f32 %v4368_v26, %v2114_v46 }
 0x2ba   : > { %v3106_v3 = vpack.c.bf16 %v2245_v21, %v2244_v20  ;;  %v2248_v1 = vmax.f32 %v2184_v44, 0.0  ;;  %3145 = vst [vmem:[#allocation11 + $0xe0] sm:$0xff] %v3101_v24  }
 0x2bb   : > { %v3111_v29 = vpack.c.bf16 %v2247_v25, %v2246_v35  ;;  %v2249_v56 = vmax.f32 %v2185_v27, 0.0 }
 0x2bc   : > { %3146 = vst [vmem:[#allocation11 + $0xe8] sm:$0xff] %v3106_v3  }
 0x2bd   : > { %3147 = vst [vmem:[#allocation11 + $0xf0] sm:$0xff] %v3111_v29   ;;  %v3116_v59 = vpack.c.bf16 %v2249_v56, %v2248_v1 }
 0x2bf   : > { %3148 = vst [vmem:[#allocation11 + $0xf8] sm:$0xff] %v3116_v59  }
 0x2c0 PF: > { %p3340_p1 = scmp.eq.s32.totalorder %s3832_s21, 5  ;;  %s3775_s18 = smov [#allocation11]  }
 0x2c1   : > { %s2578_s23 = sshll.u32 %s3775_s18, 4  ;;  %s2579_s23 = int_to_ptr.vmem [resolvable:$true] %s2578_s23 }
 0x2c2   : > { %s3670_s24 = scalar_lea.vmem %s2579_s23, 4096  ;;  %p3677_p7 = scmp.lt.s32.totalorder %s2579_s23, %s2579_s23 }
 0x2c3   : > { %p3671_p2 = scmp.ne.s32.totalorder %s2579_s23, %s3670_s24  ;;  %p3678_p9 = scmp.lt.s32.totalorder %s3670_s24, %s3670_s24 }
 0x2c5   : > { %p3672_p13 = pnand %p3671_p2, %p3340_p1  ;;  %p3679_p8 = por %p3678_p9, %p3677_p7 }
 0x2c7   : > { %p3673_p4 = pneg %p3672_p13 }
 0x2c9   : > { %p3680_p5 = pnand %p3679_p8, %p3673_p4 }
 0x2cb   : > { %3683 = shalt.err (!%p3680_p5)
}
 0x2cc   : > { %s3684_s10 = scalar_lea.hbm %s4541_s4, 4096 }
 0x2cd   : > { %p3685_p6 = scmp.ne.s32.totalorder %s4541_s4, %s3684_s10  ;;  %p3690_p3 = scmp.lt.u32.totalorder %s3684_s10, %s4541_s4 }
 0x2cf   : > { %p3686_p10 = pnand %p3685_p6, %p3340_p1 }
 0x2d1   : > { %p3687_p0 = pneg %p3686_p10 }
 0x2d3   : > { %p3692_p11 = pnand %p3690_p3, %p3687_p0 }
 0x2d5   : > { %3695 = shalt.err (!%p3692_p11)
}
 0x2d6   : > { %s3776_s13 = smov 64   ;;  %s3777_s2 = smov 4  }
 0x2d7   : > { %3318 = dma.vmem_to_hbm [thread:$0]  (%p3340_p1), %s2579_s23, 4096, %s4541_s4, [#allocation5], %s3776_s13, %s3776_s13, %s3777_s2  }
 0x2d8   : > { %3737 = dma.done.wait (%p3340_p1), [#allocation5], 4096  }
 0x2d9   : > { %3739 = vsyncadd (%p3340_p1), [#allocation5], 4294963200 }
 0x2da PF: > { %s22_s20 = sadd.s32 1, %s3762_s20   ;;  %s4561_s15 = smov %s3746_s16 }
 0x2db   : > { %p19_p12 = scmp.ge.s32.totalorder %s22_s20, 8   ;;  %s4562_s16 = smov %s3750_s17 }
 0x2dc   : > { %s4563_s17 = smov %s3927_s9  ;;  %s4564_s18 = smov %s3758_s19 }
 0x2dd   : > { %s4565_s19 = smov %s4567_s25  ;;  %21 = sbr.rel (!%p19_p12) target bundleno = 11 (0xb), region = 105 }
 0x2e4   :  { %2594 = vsyncpa [#allocation4], 1 }
 0x2e5   :  { %2596 = vsyncpa [#allocation4 + $0x1], 1 }
 0x2e6   :  { %2597 = vsyncpa [#allocation7], 1 }
 0x2e7   :  { %2599 = vsyncpa [#allocation7 + $0x1], 1 }
 0x2e8   :  { %2600 = vsyncpa [#allocation10], 1 }
 0x2e9   :  { %2601 = vsyncpa [#allocation5], 1 }
 0x2ea   :  { %2603 = vsyncpa [#allocation5 + $0x1], 1 }

</bundles_post_ra>
